<compile_context>
chip_gen: v7x
topology: tpu7x:2x2x1
jax: 0.10.0
libtpu: 0.0.40
codegen_flags: <defaults>
</compile_context>

<pallas_src>
from functools import partial

import jax
import jax.numpy as jnp
from jax.experimental import pallas as pl
from jax.experimental.pallas import tpu as pltpu


def mha_kernel(xq_ref, xk_ref, xv_ref,
               wqt_ref, bq_ref, wk_ref, bk_ref, wvt_ref, bv_ref,
               wmt_ref, bm_ref, o_ref, *, num_heads, scale):
    BB, N, D = xq_ref.shape
    dim = D // num_heads

    # Weights / biases: loaded once per grid step, reused for all BB batches.
    wqt = wqt_ref[...]          # [D_in, D_out]  (head-major out channels)
    wk = wk_ref[...]            # [D_out, D_in]  (head-major out channels)
    wvt = wvt_ref[...]          # [D_in, D_out]  (head-major out channels)
    wmt = wmt_ref[...]          # [D_in (head-major), D_out]
    bq = bq_ref[...]            # [1, D]
    bk = bk_ref[...]            # [D, 1]
    bv = bv_ref[...]            # [1, D]
    bm = bm_ref[...]            # [1, D]

    for bb in range(BB):        # static unroll: batch elements folded per step
        xq = xq_ref[bb]         # [N, D]
        xk = xk_ref[bb]         # [D, N]
        xv = xv_ref[bb]         # [N, D]

        # 1x1-conv projections: natural MXU contractions, head-major channels.
        pq = jnp.dot(xq, wqt, preferred_element_type=jnp.float32) + bq   # [N, D]
        pk = jnp.dot(wk, xk, preferred_element_type=jnp.float32) + bk    # [D, N]
        pv = jnp.dot(xv, wvt, preferred_element_type=jnp.float32) + bv   # [N, D]

        # Merge bias folded into the accumulator init.
        merged = jnp.zeros((N, D), dtype=jnp.float32) + bm

        for h in range(num_heads):   # static unroll over heads
            lo = h * dim
            q_h = pq[:, lo:lo + dim]       # [N, dim]
            k_h = pk[lo:lo + dim, :]       # [dim, N]
            v_h = pv[:, lo:lo + dim]       # [N, dim]

            # scores / softmax (per head, exact math; approx reciprocal on EUP)
            s = jnp.dot(q_h, k_h, preferred_element_type=jnp.float32) * scale  # [N, N]
            m = jnp.max(s, axis=-1, keepdims=True)
            e = jnp.exp(s - m)
            inv = pl.reciprocal(jnp.sum(e, axis=-1, keepdims=True), approx=True)
            p = e * inv

            # prob @ value, then accumulate this head's slice of the merge conv.
            x_h = jnp.dot(p, v_h, preferred_element_type=jnp.float32)          # [N, dim]
            merged = merged + jnp.dot(x_h, wmt[lo:lo + dim, :],
                                      preferred_element_type=jnp.float32)

        o_ref[bb] = merged.astype(o_ref.dtype)


def multi_headed_attention(query, key, value, params, num_heads, *, batch_block=None):
    """query/key/value: [B, d_model, N] (Conv1d NCW). Returns [B, d_model, N]."""
    B, D, N = query.shape
    assert D % num_heads == 0
    dim = D // num_heads
    scale = 1.0 / (dim ** 0.5)

    if batch_block is None:
        # Fold batches per grid step, but keep >= 2 parallel steps when possible
        # (so both v7x TensorCores get work).
        batch_block = B // 2 if (B % 2 == 0 and B >= 4) else 1
    BB = batch_block
    assert B % BB == 0

    # Head-major channel permutation: head-major index j = h*dim + d maps to the
    # PyTorch interleaved channel c = d*num_heads + h.
    j = jnp.arange(D)
    hm = (j % dim) * num_heads + (j // dim)

    # Pre-permute / pre-transpose weights on the XLA side (free) so every
    # in-kernel contraction is a natural last-dim x first-dim matmul.
    wqt = params["wq"][hm].T             # [D_in, D_out(head-major)]
    bq = params["bq"][hm].reshape(1, D)
    wk = params["wk"][hm]                # [D_out(head-major), D_in]
    bk = params["bk"][hm].reshape(D, 1)
    wvt = params["wv"][hm].T             # [D_in, D_out(head-major)]
    bv = params["bv"][hm].reshape(1, D)
    wmt = params["wm"][:, hm].T          # [D_in(head-major), D_out]
    bm = params["bm"].reshape(1, D)

    xq = jnp.transpose(query, (0, 2, 1))   # [B, N, D]
    xv = jnp.transpose(value, (0, 2, 1))   # [B, N, D]
    xk = key                               # [B, D, N]  (kept NN for scores)

    kernel = partial(mha_kernel, num_heads=num_heads, scale=scale)
    out_nd = pl.pallas_call(
        kernel,
        out_shape=jax.ShapeDtypeStruct((B, N, D), jnp.float32),
        grid_spec=pltpu.PrefetchScalarGridSpec(
            num_scalar_prefetch=0,
            grid=(B // BB,),
            in_specs=[
                pl.BlockSpec((BB, N, D), lambda i: (i, 0, 0)),   # x_q
                pl.BlockSpec((BB, D, N), lambda i: (i, 0, 0)),   # x_k
                pl.BlockSpec((BB, N, D), lambda i: (i, 0, 0)),   # x_v
                pl.BlockSpec((D, D), lambda i: (0, 0)),          # Wq^T (perm)
                pl.BlockSpec((1, D), lambda i: (0, 0)),          # bq
                pl.BlockSpec((D, D), lambda i: (0, 0)),          # Wk   (perm)
                pl.BlockSpec((D, 1), lambda i: (0, 0)),          # bk
                pl.BlockSpec((D, D), lambda i: (0, 0)),          # Wv^T (perm)
                pl.BlockSpec((1, D), lambda i: (0, 0)),          # bv
                pl.BlockSpec((D, D), lambda i: (0, 0)),          # Wm^T (perm)
                pl.BlockSpec((1, D), lambda i: (0, 0)),          # bm
            ],
            out_specs=pl.BlockSpec((BB, N, D), lambda i: (i, 0, 0)),
        ),
        compiler_params=pltpu.CompilerParams(
            dimension_semantics=("parallel",),
            vmem_limit_bytes=32 * 1024 * 1024),
    )(xq, xk, xv, wqt, bq, wk, bk, wvt, bv, wmt, bm)

    # Back to the PyTorch NCW output layout.
    return jnp.transpose(out_nd, (0, 2, 1))


def reference(query, key, value, params, num_heads):
    """Pure-JAX replica of the PyTorch forward (eval mode) for verification."""
    B, D, N = query.shape
    dim = D // num_heads

    def conv1x1(w, b, x):
        return jnp.einsum("oc,bcn->bon", w, x) + b[None, :, None]

    q = conv1x1(params["wq"], params["bq"], query).reshape(B, dim, num_heads, N)
    k = conv1x1(params["wk"], params["bk"], key).reshape(B, dim, num_heads, N)
    v = conv1x1(params["wv"], params["bv"], value).reshape(B, dim, num_heads, N)
    scores = jnp.einsum("bdhn,bdhm->bhnm", q, k) / (dim ** 0.5)
    prob = jax.nn.softmax(scores, axis=-1)
    x = jnp.einsum("bhnm,bdhm->bdhn", prob, v).reshape(B, dim * num_heads, N)
    return conv1x1(params["wm"], params["bm"], x)


if __name__ == "__main__":
    B, d_model, num_heads, N = 4, 32, 4, 16   # dim = d_model // num_heads = 8

    root = jax.random.PRNGKey(0)
    (k_q, k_k, k_v, k_wq, k_bq, k_wk, k_bk, k_wv, k_bv, k_wm, k_bm) = \
        jax.random.split(root, 11)

    # Inputs (NCW, same convention as nn.Conv1d).
    query = jax.random.normal(k_q, (B, d_model, N), dtype=jnp.float32)
    key_t = jax.random.normal(k_k, (B, d_model, N), dtype=jnp.float32)
    value = jax.random.normal(k_v, (B, d_model, N), dtype=jnp.float32)

    # Conv1d(d_model, d_model, 1) params: weight [out,in,1] stored as [out,in].
    bound = 1.0 / (d_model ** 0.5)
    u = lambda k, shape: jax.random.uniform(k, shape, jnp.float32, -bound, bound)
    params = {
        "wq": u(k_wq, (d_model, d_model)), "bq": u(k_bq, (d_model,)),
        "wk": u(k_wk, (d_model, d_model)), "bk": u(k_bk, (d_model,)),
        "wv": u(k_wv, (d_model, d_model)), "bv": u(k_bv, (d_model,)),
        "wm": u(k_wm, (d_model, d_model)), "bm": u(k_bm, (d_model,)),
    }

    out = multi_headed_attention(query, key_t, value, params, num_heads)
    out = jax.block_until_ready(out)
    assert out.shape == (B, d_model, N)

    ref = reference(query, key_t, value, params, num_heads)
    # Tolerance loosened because the softmax uses pl.reciprocal(approx=True).
    assert jnp.allclose(out, ref, atol=2e-3, rtol=2e-3), "mismatch vs reference"

    print("KERNEL_OK")
</pallas_src>

<mosaic_0001>
module attributes {stable_mosaic.version = 11 : i64} {
  func.func @mha_kernel(%arg0: i32, %arg1: memref<2x16x32xf32, #tpu.memory_space<vmem>>, %arg2: memref<2x32x16xf32, #tpu.memory_space<vmem>>, %arg3: memref<2x16x32xf32, #tpu.memory_space<vmem>>, %arg4: memref<32x32xf32, #tpu.memory_space<vmem>>, %arg5: memref<1x32xf32, #tpu.memory_space<vmem>>, %arg6: memref<32x32xf32, #tpu.memory_space<vmem>>, %arg7: memref<32x1xf32, #tpu.memory_space<vmem>>, %arg8: memref<32x32xf32, #tpu.memory_space<vmem>>, %arg9: memref<1x32xf32, #tpu.memory_space<vmem>>, %arg10: memref<32x32xf32, #tpu.memory_space<vmem>>, %arg11: memref<1x32xf32, #tpu.memory_space<vmem>>, %arg12: memref<2x16x32xf32, #tpu.memory_space<vmem>>) attributes {dimension_semantics = [#tpu.dimension_semantics<parallel>], iteration_bounds = array<i64: 2>, scalar_prefetch = 0 : i64, scratch_operands = 0 : i64, tpu.core_type = #tpu.core_type<tc>, window_params = [{transform_indices = @transform_0, window_bounds = array<i64: 2, 16, 32>}, {transform_indices = @transform_1, window_bounds = array<i64: 2, 32, 16>}, {transform_indices = @transform_2, window_bounds = array<i64: 2, 16, 32>}, {pipeline_mode = #tpu.pipeline_mode<synchronous>, transform_indices = @transform_3, window_bounds = array<i64: 32, 32>}, {pipeline_mode = #tpu.pipeline_mode<synchronous>, transform_indices = @transform_4, window_bounds = array<i64: 1, 32>}, {pipeline_mode = #tpu.pipeline_mode<synchronous>, transform_indices = @transform_5, window_bounds = array<i64: 32, 32>}, {pipeline_mode = #tpu.pipeline_mode<synchronous>, transform_indices = @transform_6, window_bounds = array<i64: 32, 1>}, {pipeline_mode = #tpu.pipeline_mode<synchronous>, transform_indices = @transform_7, window_bounds = array<i64: 32, 32>}, {pipeline_mode = #tpu.pipeline_mode<synchronous>, transform_indices = @transform_8, window_bounds = array<i64: 1, 32>}, {pipeline_mode = #tpu.pipeline_mode<synchronous>, transform_indices = @transform_9, window_bounds = array<i64: 32, 32>}, {pipeline_mode = #tpu.pipeline_mode<synchronous>, transform_indices = @transform_10, window_bounds = array<i64: 1, 32>}, {transform_indices = @transform_11, window_bounds = array<i64: 2, 16, 32>}]} {
    %c0 = arith.constant 0 : index
    %c0_0 = arith.constant 0 : index
    %0 = vector.load %arg4[%c0, %c0_0] : memref<32x32xf32, #tpu.memory_space<vmem>>, vector<32x32xf32>
    %c0_1 = arith.constant 0 : index
    %c0_2 = arith.constant 0 : index
    %1 = vector.load %arg6[%c0_1, %c0_2] : memref<32x32xf32, #tpu.memory_space<vmem>>, vector<32x32xf32>
    %c0_3 = arith.constant 0 : index
    %c0_4 = arith.constant 0 : index
    %2 = vector.load %arg8[%c0_3, %c0_4] : memref<32x32xf32, #tpu.memory_space<vmem>>, vector<32x32xf32>
    %c0_5 = arith.constant 0 : index
    %c0_6 = arith.constant 0 : index
    %3 = vector.load %arg10[%c0_5, %c0_6] : memref<32x32xf32, #tpu.memory_space<vmem>>, vector<32x32xf32>
    %c0_7 = arith.constant 0 : index
    %c0_8 = arith.constant 0 : index
    %4 = vector.load %arg5[%c0_7, %c0_8] : memref<1x32xf32, #tpu.memory_space<vmem>>, vector<1x32xf32>
    %c0_9 = arith.constant 0 : index
    %c0_10 = arith.constant 0 : index
    %5 = vector.load %arg7[%c0_9, %c0_10] : memref<32x1xf32, #tpu.memory_space<vmem>>, vector<32x1xf32>
    %c0_11 = arith.constant 0 : index
    %c0_12 = arith.constant 0 : index
    %6 = vector.load %arg9[%c0_11, %c0_12] : memref<1x32xf32, #tpu.memory_space<vmem>>, vector<1x32xf32>
    %c0_13 = arith.constant 0 : index
    %c0_14 = arith.constant 0 : index
    %7 = vector.load %arg11[%c0_13, %c0_14] : memref<1x32xf32, #tpu.memory_space<vmem>>, vector<1x32xf32>
    %c0_15 = arith.constant 0 : index
    %c0_16 = arith.constant 0 : index
    %c0_17 = arith.constant 0 : index
    %8 = vector.load %arg1[%c0_15, %c0_16, %c0_17] : memref<2x16x32xf32, #tpu.memory_space<vmem>>, vector<1x16x32xf32>
    %9 = vector.shape_cast %8 : vector<1x16x32xf32> to vector<16x32xf32>
    %c0_18 = arith.constant 0 : index
    %c0_19 = arith.constant 0 : index
    %c0_20 = arith.constant 0 : index
    %10 = vector.load %arg2[%c0_18, %c0_19, %c0_20] : memref<2x32x16xf32, #tpu.memory_space<vmem>>, vector<1x32x16xf32>
    %11 = vector.shape_cast %10 : vector<1x32x16xf32> to vector<32x16xf32>
    %c0_21 = arith.constant 0 : index
    %c0_22 = arith.constant 0 : index
    %c0_23 = arith.constant 0 : index
    %12 = vector.load %arg3[%c0_21, %c0_22, %c0_23] : memref<2x16x32xf32, #tpu.memory_space<vmem>>, vector<1x16x32xf32>
    %13 = vector.shape_cast %12 : vector<1x16x32xf32> to vector<16x32xf32>
    %cst = arith.constant dense<0.000000e+00> : vector<16x32xf32>
    %14 = tpu.matmul %9, %0, %cst {dimension_numbers = #tpu.dot_dimension_numbers<[1], [0], [0], [1], [0, 0, 1, 1], [], []>} : vector<16x32xf32>, vector<32x32xf32>, vector<16x32xf32> -> vector<16x32xf32>
    %15 = vector.broadcast %4 : vector<1x32xf32> to vector<16x32xf32>
    %16 = arith.addf %14, %15 : vector<16x32xf32>
    %cst_24 = arith.constant dense<0.000000e+00> : vector<32x16xf32>
    %17 = tpu.matmul %1, %11, %cst_24 {dimension_numbers = #tpu.dot_dimension_numbers<[1], [0], [0], [1], [0, 0, 1, 1], [], []>} : vector<32x32xf32>, vector<32x16xf32>, vector<32x16xf32> -> vector<32x16xf32>
    %18 = vector.broadcast %5 : vector<32x1xf32> to vector<32x16xf32>
    %19 = arith.addf %17, %18 : vector<32x16xf32>
    %cst_25 = arith.constant dense<0.000000e+00> : vector<16x32xf32>
    %20 = tpu.matmul %13, %2, %cst_25 {dimension_numbers = #tpu.dot_dimension_numbers<[1], [0], [0], [1], [0, 0, 1, 1], [], []>} : vector<16x32xf32>, vector<32x32xf32>, vector<16x32xf32> -> vector<16x32xf32>
    %21 = vector.broadcast %6 : vector<1x32xf32> to vector<16x32xf32>
    %22 = arith.addf %20, %21 : vector<16x32xf32>
    %cst_26 = arith.constant 0.000000e+00 : f32
    %23 = vector.broadcast %cst_26 : f32 to vector<16x32xf32>
    %24 = vector.broadcast %7 : vector<1x32xf32> to vector<16x32xf32>
    %25 = arith.addf %23, %24 : vector<16x32xf32>
    %26 = vector.extract_strided_slice %16 {offsets = [0, 0], sizes = [16, 8], strides = [1, 1]} : vector<16x32xf32> to vector<16x8xf32>
    %27 = vector.extract_strided_slice %19 {offsets = [0, 0], sizes = [8, 16], strides = [1, 1]} : vector<32x16xf32> to vector<8x16xf32>
    %28 = vector.extract_strided_slice %22 {offsets = [0, 0], sizes = [16, 8], strides = [1, 1]} : vector<16x32xf32> to vector<16x8xf32>
    %cst_27 = arith.constant dense<0.000000e+00> : vector<16x16xf32>
    %29 = tpu.matmul %26, %27, %cst_27 {dimension_numbers = #tpu.dot_dimension_numbers<[1], [0], [0], [1], [0, 0, 1, 1], [], []>} : vector<16x8xf32>, vector<8x16xf32>, vector<16x16xf32> -> vector<16x16xf32>
    %cst_28 = arith.constant 0.353553385 : f32
    %30 = vector.broadcast %cst_28 : f32 to vector<16x16xf32>
    %31 = arith.mulf %29, %30 : vector<16x16xf32>
    %cst_29 = arith.constant dense<0xFF800000> : vector<16xf32>
    %32 = vector.multi_reduction <maximumf>, %31, %cst_29 [1] : vector<16x16xf32> to vector<16xf32>
    %33 = vector.shape_cast %32 : vector<16xf32> to vector<16x1xf32>
    %34 = vector.broadcast %33 : vector<16x1xf32> to vector<16x16xf32>
    %35 = arith.subf %31, %34 : vector<16x16xf32>
    %36 = math.exp %35 : vector<16x16xf32>
    %cst_30 = arith.constant dense<0.000000e+00> : vector<16xf32>
    %37 = vector.multi_reduction <add>, %36, %cst_30 [1] : vector<16x16xf32> to vector<16xf32>
    %38 = vector.shape_cast %37 : vector<16xf32> to vector<16x1xf32>
    %39 = tpu.reciprocal %38 {approx = true} : vector<16x1xf32> -> vector<16x1xf32>
    %40 = vector.broadcast %39 : vector<16x1xf32> to vector<16x16xf32>
    %41 = arith.mulf %36, %40 : vector<16x16xf32>
    %cst_31 = arith.constant dense<0.000000e+00> : vector<16x8xf32>
    %42 = tpu.matmul %41, %28, %cst_31 {dimension_numbers = #tpu.dot_dimension_numbers<[1], [0], [0], [1], [0, 0, 1, 1], [], []>} : vector<16x16xf32>, vector<16x8xf32>, vector<16x8xf32> -> vector<16x8xf32>
    %43 = vector.extract_strided_slice %3 {offsets = [0, 0], sizes = [8, 32], strides = [1, 1]} : vector<32x32xf32> to vector<8x32xf32>
    %cst_32 = arith.constant dense<0.000000e+00> : vector<16x32xf32>
    %44 = tpu.matmul %42, %43, %cst_32 {dimension_numbers = #tpu.dot_dimension_numbers<[1], [0], [0], [1], [0, 0, 1, 1], [], []>} : vector<16x8xf32>, vector<8x32xf32>, vector<16x32xf32> -> vector<16x32xf32>
    %45 = arith.addf %25, %44 : vector<16x32xf32>
    %46 = vector.extract_strided_slice %16 {offsets = [0, 8], sizes = [16, 8], strides = [1, 1]} : vector<16x32xf32> to vector<16x8xf32>
    %47 = vector.extract_strided_slice %19 {offsets = [8, 0], sizes = [8, 16], strides = [1, 1]} : vector<32x16xf32> to vector<8x16xf32>
    %48 = vector.extract_strided_slice %22 {offsets = [0, 8], sizes = [16, 8], strides = [1, 1]} : vector<16x32xf32> to vector<16x8xf32>
    %cst_33 = arith.constant dense<0.000000e+00> : vector<16x16xf32>
    %49 = tpu.matmul %46, %47, %cst_33 {dimension_numbers = #tpu.dot_dimension_numbers<[1], [0], [0], [1], [0, 0, 1, 1], [], []>} : vector<16x8xf32>, vector<8x16xf32>, vector<16x16xf32> -> vector<16x16xf32>
    %cst_34 = arith.constant 0.353553385 : f32
    %50 = vector.broadcast %cst_34 : f32 to vector<16x16xf32>
    %51 = arith.mulf %49, %50 : vector<16x16xf32>
    %cst_35 = arith.constant dense<0xFF800000> : vector<16xf32>
    %52 = vector.multi_reduction <maximumf>, %51, %cst_35 [1] : vector<16x16xf32> to vector<16xf32>
    %53 = vector.shape_cast %52 : vector<16xf32> to vector<16x1xf32>
    %54 = vector.broadcast %53 : vector<16x1xf32> to vector<16x16xf32>
    %55 = arith.subf %51, %54 : vector<16x16xf32>
    %56 = math.exp %55 : vector<16x16xf32>
    %cst_36 = arith.constant dense<0.000000e+00> : vector<16xf32>
    %57 = vector.multi_reduction <add>, %56, %cst_36 [1] : vector<16x16xf32> to vector<16xf32>
    %58 = vector.shape_cast %57 : vector<16xf32> to vector<16x1xf32>
    %59 = tpu.reciprocal %58 {approx = true} : vector<16x1xf32> -> vector<16x1xf32>
    %60 = vector.broadcast %59 : vector<16x1xf32> to vector<16x16xf32>
    %61 = arith.mulf %56, %60 : vector<16x16xf32>
    %cst_37 = arith.constant dense<0.000000e+00> : vector<16x8xf32>
    %62 = tpu.matmul %61, %48, %cst_37 {dimension_numbers = #tpu.dot_dimension_numbers<[1], [0], [0], [1], [0, 0, 1, 1], [], []>} : vector<16x16xf32>, vector<16x8xf32>, vector<16x8xf32> -> vector<16x8xf32>
    %63 = vector.extract_strided_slice %3 {offsets = [8, 0], sizes = [8, 32], strides = [1, 1]} : vector<32x32xf32> to vector<8x32xf32>
    %cst_38 = arith.constant dense<0.000000e+00> : vector<16x32xf32>
    %64 = tpu.matmul %62, %63, %cst_38 {dimension_numbers = #tpu.dot_dimension_numbers<[1], [0], [0], [1], [0, 0, 1, 1], [], []>} : vector<16x8xf32>, vector<8x32xf32>, vector<16x32xf32> -> vector<16x32xf32>
    %65 = arith.addf %45, %64 : vector<16x32xf32>
    %66 = vector.extract_strided_slice %16 {offsets = [0, 16], sizes = [16, 8], strides = [1, 1]} : vector<16x32xf32> to vector<16x8xf32>
    %67 = vector.extract_strided_slice %19 {offsets = [16, 0], sizes = [8, 16], strides = [1, 1]} : vector<32x16xf32> to vector<8x16xf32>
    %68 = vector.extract_strided_slice %22 {offsets = [0, 16], sizes = [16, 8], strides = [1, 1]} : vector<16x32xf32> to vector<16x8xf32>
    %cst_39 = arith.constant dense<0.000000e+00> : vector<16x16xf32>
    %69 = tpu.matmul %66, %67, %cst_39 {dimension_numbers = #tpu.dot_dimension_numbers<[1], [0], [0], [1], [0, 0, 1, 1], [], []>} : vector<16x8xf32>, vector<8x16xf32>, vector<16x16xf32> -> vector<16x16xf32>
    %cst_40 = arith.constant 0.353553385 : f32
    %70 = vector.broadcast %cst_40 : f32 to vector<16x16xf32>
    %71 = arith.mulf %69, %70 : vector<16x16xf32>
    %cst_41 = arith.constant dense<0xFF800000> : vector<16xf32>
    %72 = vector.multi_reduction <maximumf>, %71, %cst_41 [1] : vector<16x16xf32> to vector<16xf32>
    %73 = vector.shape_cast %72 : vector<16xf32> to vector<16x1xf32>
    %74 = vector.broadcast %73 : vector<16x1xf32> to vector<16x16xf32>
    %75 = arith.subf %71, %74 : vector<16x16xf32>
    %76 = math.exp %75 : vector<16x16xf32>
    %cst_42 = arith.constant dense<0.000000e+00> : vector<16xf32>
    %77 = vector.multi_reduction <add>, %76, %cst_42 [1] : vector<16x16xf32> to vector<16xf32>
    %78 = vector.shape_cast %77 : vector<16xf32> to vector<16x1xf32>
    %79 = tpu.reciprocal %78 {approx = true} : vector<16x1xf32> -> vector<16x1xf32>
    %80 = vector.broadcast %79 : vector<16x1xf32> to vector<16x16xf32>
    %81 = arith.mulf %76, %80 : vector<16x16xf32>
    %cst_43 = arith.constant dense<0.000000e+00> : vector<16x8xf32>
    %82 = tpu.matmul %81, %68, %cst_43 {dimension_numbers = #tpu.dot_dimension_numbers<[1], [0], [0], [1], [0, 0, 1, 1], [], []>} : vector<16x16xf32>, vector<16x8xf32>, vector<16x8xf32> -> vector<16x8xf32>
    %83 = vector.extract_strided_slice %3 {offsets = [16, 0], sizes = [8, 32], strides = [1, 1]} : vector<32x32xf32> to vector<8x32xf32>
    %cst_44 = arith.constant dense<0.000000e+00> : vector<16x32xf32>
    %84 = tpu.matmul %82, %83, %cst_44 {dimension_numbers = #tpu.dot_dimension_numbers<[1], [0], [0], [1], [0, 0, 1, 1], [], []>} : vector<16x8xf32>, vector<8x32xf32>, vector<16x32xf32> -> vector<16x32xf32>
    %85 = arith.addf %65, %84 : vector<16x32xf32>
    %86 = vector.extract_strided_slice %16 {offsets = [0, 24], sizes = [16, 8], strides = [1, 1]} : vector<16x32xf32> to vector<16x8xf32>
    %87 = vector.extract_strided_slice %19 {offsets = [24, 0], sizes = [8, 16], strides = [1, 1]} : vector<32x16xf32> to vector<8x16xf32>
    %88 = vector.extract_strided_slice %22 {offsets = [0, 24], sizes = [16, 8], strides = [1, 1]} : vector<16x32xf32> to vector<16x8xf32>
    %cst_45 = arith.constant dense<0.000000e+00> : vector<16x16xf32>
    %89 = tpu.matmul %86, %87, %cst_45 {dimension_numbers = #tpu.dot_dimension_numbers<[1], [0], [0], [1], [0, 0, 1, 1], [], []>} : vector<16x8xf32>, vector<8x16xf32>, vector<16x16xf32> -> vector<16x16xf32>
    %cst_46 = arith.constant 0.353553385 : f32
    %90 = vector.broadcast %cst_46 : f32 to vector<16x16xf32>
    %91 = arith.mulf %89, %90 : vector<16x16xf32>
    %cst_47 = arith.constant dense<0xFF800000> : vector<16xf32>
    %92 = vector.multi_reduction <maximumf>, %91, %cst_47 [1] : vector<16x16xf32> to vector<16xf32>
    %93 = vector.shape_cast %92 : vector<16xf32> to vector<16x1xf32>
    %94 = vector.broadcast %93 : vector<16x1xf32> to vector<16x16xf32>
    %95 = arith.subf %91, %94 : vector<16x16xf32>
    %96 = math.exp %95 : vector<16x16xf32>
    %cst_48 = arith.constant dense<0.000000e+00> : vector<16xf32>
    %97 = vector.multi_reduction <add>, %96, %cst_48 [1] : vector<16x16xf32> to vector<16xf32>
    %98 = vector.shape_cast %97 : vector<16xf32> to vector<16x1xf32>
    %99 = tpu.reciprocal %98 {approx = true} : vector<16x1xf32> -> vector<16x1xf32>
    %100 = vector.broadcast %99 : vector<16x1xf32> to vector<16x16xf32>
    %101 = arith.mulf %96, %100 : vector<16x16xf32>
    %cst_49 = arith.constant dense<0.000000e+00> : vector<16x8xf32>
    %102 = tpu.matmul %101, %88, %cst_49 {dimension_numbers = #tpu.dot_dimension_numbers<[1], [0], [0], [1], [0, 0, 1, 1], [], []>} : vector<16x16xf32>, vector<16x8xf32>, vector<16x8xf32> -> vector<16x8xf32>
    %103 = vector.extract_strided_slice %3 {offsets = [24, 0], sizes = [8, 32], strides = [1, 1]} : vector<32x32xf32> to vector<8x32xf32>
    %cst_50 = arith.constant dense<0.000000e+00> : vector<16x32xf32>
    %104 = tpu.matmul %102, %103, %cst_50 {dimension_numbers = #tpu.dot_dimension_numbers<[1], [0], [0], [1], [0, 0, 1, 1], [], []>} : vector<16x8xf32>, vector<8x32xf32>, vector<16x32xf32> -> vector<16x32xf32>
    %105 = arith.addf %85, %104 : vector<16x32xf32>
    %c0_51 = arith.constant 0 : index
    %c0_52 = arith.constant 0 : index
    %c0_53 = arith.constant 0 : index
    %106 = vector.load %arg12[%c0_51, %c0_52, %c0_53] : memref<2x16x32xf32, #tpu.memory_space<vmem>>, vector<1x16x32xf32>
    %107 = vector.shape_cast %106 : vector<1x16x32xf32> to vector<16x32xf32>
    %108 = vector.shape_cast %105 : vector<16x32xf32> to vector<1x16x32xf32>
    tpu.vector_store %arg12[%c0_51, %c0_52, %c0_53], %108 {strides = array<i32>} : memref<2x16x32xf32, #tpu.memory_space<vmem>>, vector<1x16x32xf32>,
    %c1 = arith.constant 1 : index
    %c0_54 = arith.constant 0 : index
    %c0_55 = arith.constant 0 : index
    %109 = vector.load %arg1[%c1, %c0_54, %c0_55] : memref<2x16x32xf32, #tpu.memory_space<vmem>>, vector<1x16x32xf32>
    %110 = vector.shape_cast %109 : vector<1x16x32xf32> to vector<16x32xf32>
    %c1_56 = arith.constant 1 : index
    %c0_57 = arith.constant 0 : index
    %c0_58 = arith.constant 0 : index
    %111 = vector.load %arg2[%c1_56, %c0_57, %c0_58] : memref<2x32x16xf32, #tpu.memory_space<vmem>>, vector<1x32x16xf32>
    %112 = vector.shape_cast %111 : vector<1x32x16xf32> to vector<32x16xf32>
    %c1_59 = arith.constant 1 : index
    %c0_60 = arith.constant 0 : index
    %c0_61 = arith.constant 0 : index
    %113 = vector.load %arg3[%c1_59, %c0_60, %c0_61] : memref<2x16x32xf32, #tpu.memory_space<vmem>>, vector<1x16x32xf32>
    %114 = vector.shape_cast %113 : vector<1x16x32xf32> to vector<16x32xf32>
    %cst_62 = arith.constant dense<0.000000e+00> : vector<16x32xf32>
    %115 = tpu.matmul %110, %0, %cst_62 {dimension_numbers = #tpu.dot_dimension_numbers<[1], [0], [0], [1], [0, 0, 1, 1], [], []>} : vector<16x32xf32>, vector<32x32xf32>, vector<16x32xf32> -> vector<16x32xf32>
    %116 = vector.broadcast %4 : vector<1x32xf32> to vector<16x32xf32>
    %117 = arith.addf %115, %116 : vector<16x32xf32>
    %cst_63 = arith.constant dense<0.000000e+00> : vector<32x16xf32>
    %118 = tpu.matmul %1, %112, %cst_63 {dimension_numbers = #tpu.dot_dimension_numbers<[1], [0], [0], [1], [0, 0, 1, 1], [], []>} : vector<32x32xf32>, vector<32x16xf32>, vector<32x16xf32> -> vector<32x16xf32>
    %119 = vector.broadcast %5 : vector<32x1xf32> to vector<32x16xf32>
    %120 = arith.addf %118, %119 : vector<32x16xf32>
    %cst_64 = arith.constant dense<0.000000e+00> : vector<16x32xf32>
    %121 = tpu.matmul %114, %2, %cst_64 {dimension_numbers = #tpu.dot_dimension_numbers<[1], [0], [0], [1], [0, 0, 1, 1], [], []>} : vector<16x32xf32>, vector<32x32xf32>, vector<16x32xf32> -> vector<16x32xf32>
    %122 = vector.broadcast %6 : vector<1x32xf32> to vector<16x32xf32>
    %123 = arith.addf %121, %122 : vector<16x32xf32>
    %cst_65 = arith.constant 0.000000e+00 : f32
    %124 = vector.broadcast %cst_65 : f32 to vector<16x32xf32>
    %125 = vector.broadcast %7 : vector<1x32xf32> to vector<16x32xf32>
    %126 = arith.addf %124, %125 : vector<16x32xf32>
    %127 = vector.extract_strided_slice %117 {offsets = [0, 0], sizes = [16, 8], strides = [1, 1]} : vector<16x32xf32> to vector<16x8xf32>
    %128 = vector.extract_strided_slice %120 {offsets = [0, 0], sizes = [8, 16], strides = [1, 1]} : vector<32x16xf32> to vector<8x16xf32>
    %129 = vector.extract_strided_slice %123 {offsets = [0, 0], sizes = [16, 8], strides = [1, 1]} : vector<16x32xf32> to vector<16x8xf32>
    %cst_66 = arith.constant dense<0.000000e+00> : vector<16x16xf32>
    %130 = tpu.matmul %127, %128, %cst_66 {dimension_numbers = #tpu.dot_dimension_numbers<[1], [0], [0], [1], [0, 0, 1, 1], [], []>} : vector<16x8xf32>, vector<8x16xf32>, vector<16x16xf32> -> vector<16x16xf32>
    %cst_67 = arith.constant 0.353553385 : f32
    %131 = vector.broadcast %cst_67 : f32 to vector<16x16xf32>
    %132 = arith.mulf %130, %131 : vector<16x16xf32>
    %cst_68 = arith.constant dense<0xFF800000> : vector<16xf32>
    %133 = vector.multi_reduction <maximumf>, %132, %cst_68 [1] : vector<16x16xf32> to vector<16xf32>
    %134 = vector.shape_cast %133 : vector<16xf32> to vector<16x1xf32>
    %135 = vector.broadcast %134 : vector<16x1xf32> to vector<16x16xf32>
    %136 = arith.subf %132, %135 : vector<16x16xf32>
    %137 = math.exp %136 : vector<16x16xf32>
    %cst_69 = arith.constant dense<0.000000e+00> : vector<16xf32>
    %138 = vector.multi_reduction <add>, %137, %cst_69 [1] : vector<16x16xf32> to vector<16xf32>
    %139 = vector.shape_cast %138 : vector<16xf32> to vector<16x1xf32>
    %140 = tpu.reciprocal %139 {approx = true} : vector<16x1xf32> -> vector<16x1xf32>
    %141 = vector.broadcast %140 : vector<16x1xf32> to vector<16x16xf32>
    %142 = arith.mulf %137, %141 : vector<16x16xf32>
    %cst_70 = arith.constant dense<0.000000e+00> : vector<16x8xf32>
    %143 = tpu.matmul %142, %129, %cst_70 {dimension_numbers = #tpu.dot_dimension_numbers<[1], [0], [0], [1], [0, 0, 1, 1], [], []>} : vector<16x16xf32>, vector<16x8xf32>, vector<16x8xf32> -> vector<16x8xf32>
    %144 = vector.extract_strided_slice %3 {offsets = [0, 0], sizes = [8, 32], strides = [1, 1]} : vector<32x32xf32> to vector<8x32xf32>
    %cst_71 = arith.constant dense<0.000000e+00> : vector<16x32xf32>
    %145 = tpu.matmul %143, %144, %cst_71 {dimension_numbers = #tpu.dot_dimension_numbers<[1], [0], [0], [1], [0, 0, 1, 1], [], []>} : vector<16x8xf32>, vector<8x32xf32>, vector<16x32xf32> -> vector<16x32xf32>
    %146 = arith.addf %126, %145 : vector<16x32xf32>
    %147 = vector.extract_strided_slice %117 {offsets = [0, 8], sizes = [16, 8], strides = [1, 1]} : vector<16x32xf32> to vector<16x8xf32>
    %148 = vector.extract_strided_slice %120 {offsets = [8, 0], sizes = [8, 16], strides = [1, 1]} : vector<32x16xf32> to vector<8x16xf32>
    %149 = vector.extract_strided_slice %123 {offsets = [0, 8], sizes = [16, 8], strides = [1, 1]} : vector<16x32xf32> to vector<16x8xf32>
    %cst_72 = arith.constant dense<0.000000e+00> : vector<16x16xf32>
    %150 = tpu.matmul %147, %148, %cst_72 {dimension_numbers = #tpu.dot_dimension_numbers<[1], [0], [0], [1], [0, 0, 1, 1], [], []>} : vector<16x8xf32>, vector<8x16xf32>, vector<16x16xf32> -> vector<16x16xf32>
    %cst_73 = arith.constant 0.353553385 : f32
    %151 = vector.broadcast %cst_73 : f32 to vector<16x16xf32>
    %152 = arith.mulf %150, %151 : vector<16x16xf32>
    %cst_74 = arith.constant dense<0xFF800000> : vector<16xf32>
    %153 = vector.multi_reduction <maximumf>, %152, %cst_74 [1] : vector<16x16xf32> to vector<16xf32>
    %154 = vector.shape_cast %153 : vector<16xf32> to vector<16x1xf32>
    %155 = vector.broadcast %154 : vector<16x1xf32> to vector<16x16xf32>
    %156 = arith.subf %152, %155 : vector<16x16xf32>
    %157 = math.exp %156 : vector<16x16xf32>
    %cst_75 = arith.constant dense<0.000000e+00> : vector<16xf32>
    %158 = vector.multi_reduction <add>, %157, %cst_75 [1] : vector<16x16xf32> to vector<16xf32>
    %159 = vector.shape_cast %158 : vector<16xf32> to vector<16x1xf32>
    %160 = tpu.reciprocal %159 {approx = true} : vector<16x1xf32> -> vector<16x1xf32>
    %161 = vector.broadcast %160 : vector<16x1xf32> to vector<16x16xf32>
    %162 = arith.mulf %157, %161 : vector<16x16xf32>
    %cst_76 = arith.constant dense<0.000000e+00> : vector<16x8xf32>
    %163 = tpu.matmul %162, %149, %cst_76 {dimension_numbers = #tpu.dot_dimension_numbers<[1], [0], [0], [1], [0, 0, 1, 1], [], []>} : vector<16x16xf32>, vector<16x8xf32>, vector<16x8xf32> -> vector<16x8xf32>
    %164 = vector.extract_strided_slice %3 {offsets = [8, 0], sizes = [8, 32], strides = [1, 1]} : vector<32x32xf32> to vector<8x32xf32>
    %cst_77 = arith.constant dense<0.000000e+00> : vector<16x32xf32>
    %165 = tpu.matmul %163, %164, %cst_77 {dimension_numbers = #tpu.dot_dimension_numbers<[1], [0], [0], [1], [0, 0, 1, 1], [], []>} : vector<16x8xf32>, vector<8x32xf32>, vector<16x32xf32> -> vector<16x32xf32>
    %166 = arith.addf %146, %165 : vector<16x32xf32>
    %167 = vector.extract_strided_slice %117 {offsets = [0, 16], sizes = [16, 8], strides = [1, 1]} : vector<16x32xf32> to vector<16x8xf32>
    %168 = vector.extract_strided_slice %120 {offsets = [16, 0], sizes = [8, 16], strides = [1, 1]} : vector<32x16xf32> to vector<8x16xf32>
    %169 = vector.extract_strided_slice %123 {offsets = [0, 16], sizes = [16, 8], strides = [1, 1]} : vector<16x32xf32> to vector<16x8xf32>
    %cst_78 = arith.constant dense<0.000000e+00> : vector<16x16xf32>
    %170 = tpu.matmul %167, %168, %cst_78 {dimension_numbers = #tpu.dot_dimension_numbers<[1], [0], [0], [1], [0, 0, 1, 1], [], []>} : vector<16x8xf32>, vector<8x16xf32>, vector<16x16xf32> -> vector<16x16xf32>
    %cst_79 = arith.constant 0.353553385 : f32
    %171 = vector.broadcast %cst_79 : f32 to vector<16x16xf32>
    %172 = arith.mulf %170, %171 : vector<16x16xf32>
    %cst_80 = arith.constant dense<0xFF800000> : vector<16xf32>
    %173 = vector.multi_reduction <maximumf>, %172, %cst_80 [1] : vector<16x16xf32> to vector<16xf32>
    %174 = vector.shape_cast %173 : vector<16xf32> to vector<16x1xf32>
    %175 = vector.broadcast %174 : vector<16x1xf32> to vector<16x16xf32>
    %176 = arith.subf %172, %175 : vector<16x16xf32>
    %177 = math.exp %176 : vector<16x16xf32>
    %cst_81 = arith.constant dense<0.000000e+00> : vector<16xf32>
    %178 = vector.multi_reduction <add>, %177, %cst_81 [1] : vector<16x16xf32> to vector<16xf32>
    %179 = vector.shape_cast %178 : vector<16xf32> to vector<16x1xf32>
    %180 = tpu.reciprocal %179 {approx = true} : vector<16x1xf32> -> vector<16x1xf32>
    %181 = vector.broadcast %180 : vector<16x1xf32> to vector<16x16xf32>
    %182 = arith.mulf %177, %181 : vector<16x16xf32>
    %cst_82 = arith.constant dense<0.000000e+00> : vector<16x8xf32>
    %183 = tpu.matmul %182, %169, %cst_82 {dimension_numbers = #tpu.dot_dimension_numbers<[1], [0], [0], [1], [0, 0, 1, 1], [], []>} : vector<16x16xf32>, vector<16x8xf32>, vector<16x8xf32> -> vector<16x8xf32>
    %184 = vector.extract_strided_slice %3 {offsets = [16, 0], sizes = [8, 32], strides = [1, 1]} : vector<32x32xf32> to vector<8x32xf32>
    %cst_83 = arith.constant dense<0.000000e+00> : vector<16x32xf32>
    %185 = tpu.matmul %183, %184, %cst_83 {dimension_numbers = #tpu.dot_dimension_numbers<[1], [0], [0], [1], [0, 0, 1, 1], [], []>} : vector<16x8xf32>, vector<8x32xf32>, vector<16x32xf32> -> vector<16x32xf32>
    %186 = arith.addf %166, %185 : vector<16x32xf32>
    %187 = vector.extract_strided_slice %117 {offsets = [0, 24], sizes = [16, 8], strides = [1, 1]} : vector<16x32xf32> to vector<16x8xf32>
    %188 = vector.extract_strided_slice %120 {offsets = [24, 0], sizes = [8, 16], strides = [1, 1]} : vector<32x16xf32> to vector<8x16xf32>
    %189 = vector.extract_strided_slice %123 {offsets = [0, 24], sizes = [16, 8], strides = [1, 1]} : vector<16x32xf32> to vector<16x8xf32>
    %cst_84 = arith.constant dense<0.000000e+00> : vector<16x16xf32>
    %190 = tpu.matmul %187, %188, %cst_84 {dimension_numbers = #tpu.dot_dimension_numbers<[1], [0], [0], [1], [0, 0, 1, 1], [], []>} : vector<16x8xf32>, vector<8x16xf32>, vector<16x16xf32> -> vector<16x16xf32>
    %cst_85 = arith.constant 0.353553385 : f32
    %191 = vector.broadcast %cst_85 : f32 to vector<16x16xf32>
    %192 = arith.mulf %190, %191 : vector<16x16xf32>
    %cst_86 = arith.constant dense<0xFF800000> : vector<16xf32>
    %193 = vector.multi_reduction <maximumf>, %192, %cst_86 [1] : vector<16x16xf32> to vector<16xf32>
    %194 = vector.shape_cast %193 : vector<16xf32> to vector<16x1xf32>
    %195 = vector.broadcast %194 : vector<16x1xf32> to vector<16x16xf32>
    %196 = arith.subf %192, %195 : vector<16x16xf32>
    %197 = math.exp %196 : vector<16x16xf32>
    %cst_87 = arith.constant dense<0.000000e+00> : vector<16xf32>
    %198 = vector.multi_reduction <add>, %197, %cst_87 [1] : vector<16x16xf32> to vector<16xf32>
    %199 = vector.shape_cast %198 : vector<16xf32> to vector<16x1xf32>
    %200 = tpu.reciprocal %199 {approx = true} : vector<16x1xf32> -> vector<16x1xf32>
    %201 = vector.broadcast %200 : vector<16x1xf32> to vector<16x16xf32>
    %202 = arith.mulf %197, %201 : vector<16x16xf32>
    %cst_88 = arith.constant dense<0.000000e+00> : vector<16x8xf32>
    %203 = tpu.matmul %202, %189, %cst_88 {dimension_numbers = #tpu.dot_dimension_numbers<[1], [0], [0], [1], [0, 0, 1, 1], [], []>} : vector<16x16xf32>, vector<16x8xf32>, vector<16x8xf32> -> vector<16x8xf32>
    %204 = vector.extract_strided_slice %3 {offsets = [24, 0], sizes = [8, 32], strides = [1, 1]} : vector<32x32xf32> to vector<8x32xf32>
    %cst_89 = arith.constant dense<0.000000e+00> : vector<16x32xf32>
    %205 = tpu.matmul %203, %204, %cst_89 {dimension_numbers = #tpu.dot_dimension_numbers<[1], [0], [0], [1], [0, 0, 1, 1], [], []>} : vector<16x8xf32>, vector<8x32xf32>, vector<16x32xf32> -> vector<16x32xf32>
    %206 = arith.addf %186, %205 : vector<16x32xf32>
    %c1_90 = arith.constant 1 : index
    %c0_91 = arith.constant 0 : index
    %c0_92 = arith.constant 0 : index
    %207 = vector.load %arg12[%c1_90, %c0_91, %c0_92] : memref<2x16x32xf32, #tpu.memory_space<vmem>>, vector<1x16x32xf32>
    %208 = vector.shape_cast %207 : vector<1x16x32xf32> to vector<16x32xf32>
    %209 = vector.shape_cast %206 : vector<16x32xf32> to vector<1x16x32xf32>
    tpu.vector_store %arg12[%c1_90, %c0_91, %c0_92], %209 {strides = array<i32>} : memref<2x16x32xf32, #tpu.memory_space<vmem>>, vector<1x16x32xf32>,
    return
  }
  func.func @transform_0(%arg0: i32) -> (i32, i32, i32) {
    %c0_i32 = arith.constant 0 : i32
    %c0_i32_0 = arith.constant 0 : i32
    %c0_i32_1 = arith.constant 0 : i32
    return %arg0, %c0_i32, %c0_i32_0 : i32, i32, i32
  }
  func.func @transform_1(%arg0: i32) -> (i32, i32, i32) {
    %c0_i32 = arith.constant 0 : i32
    %c0_i32_0 = arith.constant 0 : i32
    %c0_i32_1 = arith.constant 0 : i32
    return %arg0, %c0_i32, %c0_i32_0 : i32, i32, i32
  }
  func.func @transform_2(%arg0: i32) -> (i32, i32, i32) {
    %c0_i32 = arith.constant 0 : i32
    %c0_i32_0 = arith.constant 0 : i32
    %c0_i32_1 = arith.constant 0 : i32
    return %arg0, %c0_i32, %c0_i32_0 : i32, i32, i32
  }
  func.func @transform_3(%arg0: i32) -> (i32, i32) {
    %c0_i32 = arith.constant 0 : i32
    %c0_i32_0 = arith.constant 0 : i32
    %c0_i32_1 = arith.constant 0 : i32
    return %c0_i32, %c0_i32_0 : i32, i32
  }
  func.func @transform_4(%arg0: i32) -> (i32, i32) {
    %c0_i32 = arith.constant 0 : i32
    %c0_i32_0 = arith.constant 0 : i32
    %c0_i32_1 = arith.constant 0 : i32
    return %c0_i32, %c0_i32_0 : i32, i32
  }
  func.func @transform_5(%arg0: i32) -> (i32, i32) {
    %c0_i32 = arith.constant 0 : i32
    %c0_i32_0 = arith.constant 0 : i32
    %c0_i32_1 = arith.constant 0 : i32
    return %c0_i32, %c0_i32_0 : i32, i32
  }
  func.func @transform_6(%arg0: i32) -> (i32, i32) {
    %c0_i32 = arith.constant 0 : i32
    %c0_i32_0 = arith.constant 0 : i32
    %c0_i32_1 = arith.constant 0 : i32
    return %c0_i32, %c0_i32_0 : i32, i32
  }
  func.func @transform_7(%arg0: i32) -> (i32, i32) {
    %c0_i32 = arith.constant 0 : i32
    %c0_i32_0 = arith.constant 0 : i32
    %c0_i32_1 = arith.constant 0 : i32
    return %c0_i32, %c0_i32_0 : i32, i32
  }
  func.func @transform_8(%arg0: i32) -> (i32, i32) {
    %c0_i32 = arith.constant 0 : i32
    %c0_i32_0 = arith.constant 0 : i32
    %c0_i32_1 = arith.constant 0 : i32
    return %c0_i32, %c0_i32_0 : i32, i32
  }
  func.func @transform_9(%arg0: i32) -> (i32, i32) {
    %c0_i32 = arith.constant 0 : i32
    %c0_i32_0 = arith.constant 0 : i32
    %c0_i32_1 = arith.constant 0 : i32
    return %c0_i32, %c0_i32_0 : i32, i32
  }
  func.func @transform_10(%arg0: i32) -> (i32, i32) {
    %c0_i32 = arith.constant 0 : i32
    %c0_i32_0 = arith.constant 0 : i32
    %c0_i32_1 = arith.constant 0 : i32
    return %c0_i32, %c0_i32_0 : i32, i32
  }
  func.func @transform_11(%arg0: i32) -> (i32, i32, i32) {
    %c0_i32 = arith.constant 0 : i32
    %c0_i32_0 = arith.constant 0 : i32
    %c0_i32_1 = arith.constant 0 : i32
    return %arg0, %c0_i32, %c0_i32_0 : i32, i32, i32
  }
}

</mosaic_0001>

<bundles_post_ra>
// kernel: tpu_custom_call.1
= control target key start
LH: loop header
LB: loop body
LE: loop exit
PB: predicated region body
PF: predicated region fallthrough
CT: control target
= control target key end

     0   :  { %s4612_s0 = inlined_call_operand.vmem [shape: f32[4,16,32], index: 0, kind: input, shape index: {}]   ;;  %s4613_s1 = inlined_call_operand.vmem [shape: f32[4,32,16], index: 1, kind: input, shape index: {}]   ;;  %s4614_s2 = inlined_call_operand.vmem [shape: f32[4,16,32], index: 2, kind: input, shape index: {}]   ;;  %s4615_s3 = inlined_call_operand.vmem [shape: f32[32,32], index: 3, kind: input, shape index: {}]   ;;  %s4616_s4 = inlined_call_operand.vmem [shape: f32[1,32], index: 4, kind: input, shape index: {}]   ;;  %s4617_s5 = inlined_call_operand.vmem [shape: f32[32,32], index: 5, kind: input, shape index: {}]   ;;  %s4618_s6 = inlined_call_operand.vmem [shape: f32[32,1], index: 6, kind: input, shape index: {}]   ;;  %s4619_s7 = inlined_call_operand.vmem [shape: f32[32,32], index: 7, kind: input, shape index: {}]   ;;  %s4620_s8 = inlined_call_operand.vmem [shape: f32[1,32], index: 8, kind: input, shape index: {}]   ;;  %s4621_s9 = inlined_call_operand.vmem [shape: f32[32,32], index: 9, kind: input, shape index: {}]   ;;  %s4622_s10 = inlined_call_operand.vmem [shape: f32[1,32], index: 10, kind: input, shape index: {}]   ;;  %s4623_s11 = inlined_call_operand.hbm [shape: f32[4,16,32], index: 11, kind: output, shape index: {}]  }
   0x1   :  { %4624 = sst [smem:[#allocation5_spill]] %s4612_s0 }
   0x2   :  { %16 = vsyncpa [#allocation3], 0 }
   0x3   :  { %18 = vsyncpa [#allocation3 + $0x1], 0  ;;  %s4139_s17 = smov 0   ;;  %s4141_s18 = smov 0  }
   0x4   :  { %s4143_s19 = smov 0   ;;  %s4145_s20 = smov 0  }
   0x5 LB: > { %s4160_s21 = sadd.s32 4294967295, %s4070_s20   ;;  %s3341_s22 = sadd.s32 4294967294, %s4070_s20   ;;  %s4070_s20 = sphi %s4145_s20, %s4631_s20   ;;  %s4066_s19 = sphi %s4143_s19, %s4630_s19   ;;  %s4062_s18 = sphi %s4141_s18, %s4629_s18   ;;  %s4058_s17 = sphi %s4139_s17, %s4628_s17  }
   0x6   : > { %s4164_s23 = sadd.s32 1, %s4070_s20   ;;  %s277_s24 = sadd.s32 1, %s4066_s19 }
   0x7   : > { %s274_s25 = ssub.s32 %s4070_s20, %s4164_s23  ;;  %p287_p0 = scmp.ne.s32.totalorder %s4066_s19, %s4062_s18 }
   0x8   : > { %p275_p1 = scmp.eq.s32.totalorder %s274_s25, 0  ;;  %p288_p2 = scmp.eq.s32.totalorder %s4160_s21, 1 }
   0x9   : > { %p293_p3 = scmp.ne.s32.totalorder %s4062_s18, %s4058_s17  ;;  %p294_p4 = scmp.eq.s32.totalorder %s3341_s22, 1 }
   0xa   : > { %s4175_s26 = scalar_select %p275_p1, %s4066_s19, %s277_s24  }
   0xb   : > { %p4177_p5 = por %p288_p2, %p287_p0  ;;  %p4181_p6 = por %p294_p4, %p293_p3 }
   0xc   : > { %p3344_p7 = scmp.ge.s32.totalorder %s4070_s20, 1  ;;  %p366_p8 = scmp.lt.s32.totalorder %s4070_s20, 3 }
   0xe   : > { %p367_p9 = pnand %p3344_p7, %p366_p8 }
   0xf   : > { %v441_v0 = vld [vmem:[%s4615_s3] sm:$0xff] (!%p367_p9)  ;;  %v442_v1 = vld [vmem:[%s4615_s3 + $0x8] sm:$0xff] (!%p367_p9)  ;;  %s3346_s14 = sshll.u32 (!%p367_p9), %s4160_s21, 1  ;;  %v443_v2 = vld [vmem:[%s4615_s3 + $0x10] sm:$0xff] (!%p367_p9)  ;;  %vm478_vm0 = vcmask (!%p367_p9), 261120   ;;  %v4072_v6 = vmov (!%p367_p9), 0  }
  0x10   : > { %370 = sbr.rel (%p367_p9) target bundleno = 4361 (0x1109), region = 64  ;;  %v4197_v3 = vpack.c.bf16 (!%p367_p9), %v442_v1, %v441_v0  ;;  %p420_p10 = scmp.lt.s32.totalorder (!%p367_p9), %s3346_s14, 3  ;;  %v444_v4 = vld [vmem:[%s4615_s3 + $0x18] sm:$0xff] (!%p367_p9)  ;;  %v4205_v5 = vld [vmem:[%s4617_s5] sm:$0xff] (!%p367_p9)  ;;  %3912 = vset.pattern.permute.xlu0 (!%p367_p9), %v4072_v6  ;;  %3913 = vset.pattern.permute.xlu1 (!%p367_p9), %v4072_v6  ;;  %v450_v18 = vld [vmem:[%s4619_s7 + $0x8] sm:$0xff] (!%p367_p9)  ;;  %vm771_vm1 = vcmask (!%p367_p9), 64512  }
  0x11   : > { %v4207_v7 = vpack.c.bf16 (!%p367_p9), %v444_v4, %v443_v2  ;;  %3582 = vmatprep.mubr.msk.f32.mxu1 (!%p367_p9), %vm478_vm0, %v4205_v5  ;;  %v458_v8 = vld [vmem:[%s4618_s6] sm:$0xff] (!%p367_p9)  ;;  %s4627_s0 = sld [smem:[#allocation5_spill]] (!%p367_p9)  ;;  %v451_v20 = vld [vmem:[%s4619_s7 + $0x10] sm:$0xff] (!%p367_p9)  ;;  %v452_v21 = vld [vmem:[%s4619_s7 + $0x18] sm:$0xff] (!%p367_p9)  ;;  %vm855_vm2 = vcmask (!%p367_p9), 130048   ;;  %s4074_s12 = smov (!%p367_p9), 112  }
  0x12   : > { %3772 = vmatprep.subr.bf16.mxu0 (!%p367_p9), %v4197_v3  ;;  %562 = vperm.xlu0 (!%p367_p9), %3912, %v458_v8   ;;  %v449_v17 = vld [vmem:[%s4619_s7] sm:$0xff] (!%p367_p9)  ;;  %v4257_v22 = vld [vmem:[%s4617_s5 + $0x8] sm:$0xff] (!%p367_p9)  ;;  %v4263_v23 = vld [vmem:[%s4617_s5 + $0x10] sm:$0xff] (!%p367_p9)  ;;  %v4265_v24 = vpack.c.bf16 (!%p367_p9), %v452_v21, %v451_v20  ;;  %s4075_s29 = smov (!%p367_p9), 104  }
  0x13   : > { %3774 = vmatpush3.bf16.msra.mxu0 (!%p367_p9), %v4197_v3  ;;  %v4246_v19 = vpack.c.bf16 (!%p367_p9), %v450_v18, %v449_v17  ;;  %v4280_v25 = vld [vmem:[%s4617_s5 + $0x18] sm:$0xff] (!%p367_p9)  ;;  %v4293_v28 = vld [vmem:[%s4616_s4] ss:$0 sm:$0xff] (!%p367_p9)  ;;  %v459_v52 = vld [vmem:[%s4618_s6 + $0x8] sm:$0xff] (!%p367_p9) }
  0x14   : > { %3776 = vmatprep.subr.bf16.mxu0 (!%p367_p9), %v4207_v7  ;;  %v4313_v39 = vld [vmem:[%s4620_s8] ss:$0 sm:$0xff] (!%p367_p9)  ;;  %v460_v53 = vld [vmem:[%s4618_s6 + $0x10] sm:$0xff] (!%p367_p9) }
  0x15   : > { %v4352_v17 = vld [vmem:[%s4621_s9] sm:$0xff] (!%p367_p9) }
  0x17   : > { %s4633_s14 = smov (!%p420_p10, %s3346_s14), 3  ;;  %3778 = vmatpush3.bf16.msra.mxu0 %v4207_v7 }
  0x18   : > { %s3439_s13 = sshll.u32 %s4633_s14, 5  ;;  %s3438_s15 = sshll.u32 %s4633_s14, 4 }
  0x19   : > { %s4224_s24 = scalar_lea.vmem %s4613_s1, %s3439_s13  ;;  %s4229_s30 = scalar_lea.vmem %s4627_s0, %s3438_s15 }
  0x1a   : > { %v466_v9 = vld [vmem:[%s4224_s24] sm:$0xff]  ;;  %v467_v10 = vld [vmem:[%s4224_s24 + $0x8] sm:$0xff]  ;;  %v468_v11 = vld [vmem:[%s4224_s24 + $0x10] sm:$0xff]  ;;  %s4270_s0 = scalar_lea.vmem %s4614_s2, %s3438_s15  ;;  %s4073_s15 = smov 120  }
  0x1b   : > { %v3779_v12 = vpack.c.bf16 %v467_v10, %v466_v9  ;;  %v469_v13 = vld [vmem:[%s4224_s24 + $0x18] sm:$0xff]  ;;  %v464_v14 = vld [vmem:[%s4229_s30] sm:$0xff]  ;;  %v465_v15 = vld [vmem:[%s4229_s30 + $0x8] sm:$0xff] }
  0x1c   : > { %v3783_v16 = vpack.c.bf16 %v469_v13, %v468_v11  ;;  %3571 = vmatprep.mubr.msk.f32.mxu0 %vm478_vm0, %v464_v14  ;;  %v470_v26 = vld [vmem:[%s4270_s0] sm:$0xff]  ;;  %v471_v27 = vld [vmem:[%s4270_s0 + $0x8] sm:$0xff] }
  0x1d   : > { %3780 = vmatprep.subr.bf16.mxu1 %v3779_v12  ;;  %3572 = vmatmul.mubr.msk.f32.vlgmr.msra.gmra.mrb[0].mxu0 %vm478_vm0, %v465_v15 }
  0x1e   : > { %3782 = vmatpush3.bf16.msra.mxu1 %v3779_v12 }
  0x1f   : > { %3784 = vmatprep.subr.bf16.mxu1 %v3783_v16 }
  0x22   : > { %3786 = vmatpush3.bf16.msra.mxu1 %v3783_v16 }
  0x23   : > { %3788 = vmatprep.subr.bf16.mxu1 %v4246_v19 }
  0x25   : > { %3583 = vmatmul.mubr.msk.f32.vlgmr.msra.gmra.mrb[0].mxu1 %vm478_vm0, %v4257_v22 }
  0x26   : > { %3790 = vmatpush3.bf16.msra.mxu1 %v4246_v19  ;;  %3585 = vmatprep.mubr.msk.f32.mxu1 %vm478_vm0, %v4263_v23 }
  0x27   : > { %3792 = vmatprep.subr.bf16.mxu1 %v4265_v24 }
  0x29   : > { %3586 = vmatmul.mubr.msk.f32.gmra.mrb[2].mxu1 %vm478_vm0, %v4280_v25 }
  0x2a   : > { %3794 = vmatpush3.bf16.msra.mxu1 %v4265_v24  ;;  %3596 = vmatprep.mubr.msk.f32.mxu1 %vm478_vm0, %v470_v26 }
  0x2d   : > { %3597 = vmatmul.mubr.msk.f32.vlgmr.msra.gmra.mrb[4].mxu1 %vm478_vm0, %v471_v27 }
  0x91   : > { %v4300_v32 = vpop.permute.xlu0 %562 }
  0xf0   : > { %v3573_v29 = vpop.f32.mrb[0].mxu0 }
  0xf1   : > { %v551_v30 = vpop.f32.mrb[1].mxu0  ;;  %v4304_v36 = vadd.f32 %v3573_v29, %v4293_v28 }
  0xf2   : > { %v4296_v31 = vadd.f32 %v4293_v28, %v551_v30 }
  0xf4   : > { %3601 = vmatprep.mubr.msk.f32.mxu1 %vm771_vm1, %v4296_v31 }
  0xf8   : > { %v3584_v33 = vpop.f32.mrb[0].mxu1 }
  0xf9   : > { %v658_v34 = vpop.f32.mrb[1].mxu1 }
  0xfa   : > { %v659_v35 = vadd.f32 %v658_v34, %v4300_v32 }
  0xfc   : > { %3599 = vmatprep.subr.mxu1 %v659_v35  ;;  %v4306_v37 = vpop.f32.mrb[2].mxu1 }
  0xfd   : > { %3600 = vmatpush3.msra.mxu1 %v659_v35  ;;  %v668_v38 = vpop.f32.mrb[3].mxu1 }
  0xfe   : > { %3602 = vmatmul.mubr.msk.f32.vlgmr.msra.gmra.mrb[6].mxu1 %vm771_vm1, %v4304_v36  ;;  %3611 = vmatprep.subr.mxu1 %v4352_v17 }
  0xff   : > { %3612 = vmatpush3.msra.mxu1 %v4352_v17 }
 0x100   : > { %v3598_v40 = vpop.f32.mrb[4].mxu1 }
 0x101   : > { %v761_v41 = vadd.f32 %v3598_v40, %v4313_v39  ;;  %v755_v42 = vpop.f32.mrb[5].mxu1 }
 0x102   : > { %v756_v43 = vadd.f32 %v4313_v39, %v755_v42 }
 0x104   : > { %v3795_v44 = vpack.c.bf16 %v761_v41, %v756_v43  ;;  %v4317_v45 = vpack.i.bf16 %v761_v41, %v756_v43 }
 0x106   : > { %3796 = vmatprep.subr.bf16.mxu0 %v3795_v44 }
 0x107   : > { %3798 = vmatpush3.bf16.msra.mxu0 %v3795_v44 }
 0x1d1   : > { %v3603_v46 = vpop.f32.mrb[6].mxu1 }
 0x1d2   : > { %v854_v47 = vmul.f32 0.35355338, %v3603_v46  ;;  %v844_v48 = vpop.f32.mrb[7].mxu1 }
 0x1d3   : > { %v853_v49 = vmul.f32 0.35355338, %v844_v48 }
 0x1d4   : > { %v859_v50 = vsel %vm855_vm2, %v854_v47, -inf }
 0x1d5   : > { %860 = vmax.xlane.f32.xlu1 %v859_v50  ;;  %v856_v51 = vsel %vm855_vm2, %v853_v49, -inf }
 0x1d6   : > { %857 = vmax.xlane.f32.xlu0 %v856_v51 }
 0x1e6   : > { %567 = vperm.xlu1 %3913, %v459_v52  }
 0x1ea   : > { %572 = vperm.xlu1 %3913, %v460_v53  }
 0x1ec   : > { %1044 = vrot.lane.b32.xlu0 %v4304_v36, %s4073_s15 }
 0x1ee   : > { %1042 = vrot.lane.b32.xlu1 %v4296_v31, %s4073_s15 }
 0x1f2   : > { %1321 = vrot.lane.b32.xlu1 %v4296_v31, %s4074_s12 }
 0x262   : > { %v861_v54 = vpop.xlane.xlu1 %860 }
 0x263   : > { %v863_v55 = vsub.f32 %v854_v47, %v861_v54  ;;  %v858_v56 = vpop.xlane.xlu0 %857 }
 0x264   : > { %v862_v57 = vsub.f32 %v853_v49, %v858_v56 }
 0x265   : > { %v866_v58 = vmul.f32 1.442695, %v863_v55 }
 0x266   : > { %v864_v59 = vmul.f32 1.442695, %v862_v57  ;;  %v4333_v60 = vpop.permute.xlu1 %567 }
 0x267   : > { %3944 = vpow2.f32 %v866_v58  ;;  %v664_v61 = vadd.f32 %v3584_v33, %v4333_v60  ;;  %v1045_v15 = vpop.permute.xlu0 %1044 }
 0x268   : > { %3946 = vpow2.f32 %v864_v59 }
 0x269   : > { %3616 = vmatprep.subr.mxu0 %v664_v61 }
 0x26a   : > { %v4340_v2 = vpop.permute.xlu1 %572 }
 0x26b   : > { %v669_v14 = vadd.f32 %v668_v38, %v4340_v2  ;;  %v461_v38 = vld [vmem:[%s4618_s6 + $0x18] sm:$0xff] }
 0x26e   : > { %v1043_v4 = vpop.permute.xlu1 %1042 }
 0x271   : > { %v3945_v62 = vpop.eup %3944 }
 0x272   : > { %v871_v63 = vsel %vm855_vm2, %v3945_v62, 0.0  ;;  %v3947_v0 = vpop.eup %3946  ;;  %v1322_v6 = vpop.permute.xlu1 %1321 }
 0x273   : > { %872 = vadd.xlane.f32.xlu1 %v871_v63  ;;  %v868_v1 = vsel %vm855_vm2, %v3947_v0, 0.0 }
 0x277   : > { %869 = vadd.xlane.f32.xlu1 %v868_v1 }
 0x288   : > { %1323 = vrot.lane.b32.xlu1 %v4304_v36, %s4074_s12 }
 0x300   : > { %v873_v8 = vpop.xlane.xlu1 %872 }
 0x301   : > { %3948 = vrcp.f32 %v873_v8 }
 0x304   : > { %v870_v9 = vpop.xlane.xlu1 %869 }
 0x305   : > { %3950 = vrcp.f32 %v870_v9 }
 0x308   : > { %v1324_v16 = vpop.permute.xlu1 %1323 }
 0x30b   : > { %v3949_v10 = vpop.eup %3948 }
 0x30c   : > { %v877_v13 = vmul.f32 %v3949_v10, %v3945_v62 }
 0x30f   : > { %v3951_v11 = vpop.eup %3950 }
 0x310   : > { %v876_v12 = vmul.f32 %v3951_v11, %v3947_v0 }
 0x312   : > { %3608 = vmatprep.mubr.msk.f32.mxu0 %vm855_vm2, %v876_v12 }
 0x313   : > { %3609 = vmatmul.mubr.msk.f32.vlgmr.msra.gmra.mrb[2].mxu0 %vm855_vm2, %v877_v13 }
 0x314   : > { %3617 = vmatpush3.msra.mxu0 %v664_v61  ;;  %3618 = vmatprep.mubr.msk.f32.mxu0 %vm771_vm1, %v1043_v4 }
 0x315   : > { %3633 = vmatprep.subr.mxu0 %v669_v14 }
 0x317   : > { %3619 = vmatmul.mubr.msk.f32.vlgmr.msra.gmra.mrb[4].mxu0 %vm771_vm1, %v1045_v15 }
 0x318   : > { %3634 = vmatpush3.msra.mxu0 %v669_v14  ;;  %3635 = vmatprep.mubr.msk.f32.mxu0 %vm771_vm1, %v1322_v6 }
 0x31b   : > { %3636 = vmatmul.mubr.msk.f32.vlgmr.msra.gmra.mrb[6].mxu0 %vm771_vm1, %v1324_v16 }
 0x3e6   : > { %v3610_v18 = vpop.f32.mrb[2].mxu0 }
 0x3e7   : > { %v950_v20 = vpop.f32.mrb[3].mxu0 }
 0x3e8   : > { %3613 = vmatprep.mubr.msk.f32.mxu1 %vm771_vm1, %v950_v20 }
 0x3e9   : > { %3614 = vmatmul.mubr.msk.f32.vlgmr.msra.gmra.mrb[8].mxu1 %vm771_vm1, %v3610_v18 }
 0x3ea   : > { %v3620_v21 = vpop.f32.mrb[4].mxu0 }
 0x3eb   : > { %v1116_v26 = vpop.f32.mrb[5].mxu0  ;;  %v1126_v40 = vmul.f32 0.35355338, %v3620_v21 }
 0x3ed   : > { %v1130_v41 = vsel %vm855_vm2, %v1126_v40, -inf }
 0x3ee   : > { %v3637_v27 = vpop.f32.mrb[6].mxu0 }
 0x3ef   : > { %v1405_v29 = vmul.f32 0.35355338, %v3637_v27  ;;  %v1395_v30 = vpop.f32.mrb[7].mxu0 }
 0x3f0   : > { %v1404_v33 = vmul.f32 0.35355338, %v1395_v30 }
 0x3f1   : > { %v1409_v34 = vsel %vm855_vm2, %v1405_v29, -inf }
 0x3f2   : > { %1410 = vmax.xlane.f32.xlu0 %v1409_v34  ;;  %v1406_v35 = vsel %vm855_vm2, %v1404_v33, -inf }
 0x3f3   : > { %1407 = vmax.xlane.f32.xlu1 %v1406_v35 }
 0x404   : > { %3915 = vrot.lane.b32.xlu1 %v4317_v45, %s4074_s12 }
 0x408   : > { %577 = vperm.xlu0 %3912, %v461_v38  }
 0x40c   : > { %1600 = vrot.lane.b32.xlu0 %v4304_v36, %s4075_s29 }
 0x42b   : > { %1131 = vmax.xlane.f32.xlu0 %v1130_v41 }
 0x47f   : > { %v1411_v42 = vpop.xlane.xlu0 %1410 }
 0x480   : > { %v1413_v43 = vsub.f32 %v1405_v29, %v1411_v42  ;;  %v1408_v44 = vpop.xlane.xlu1 %1407 }
 0x481   : > { %v1412_v46 = vsub.f32 %v1404_v33, %v1408_v44 }
 0x482   : > { %v1416_v47 = vmul.f32 1.442695, %v1413_v43 }
 0x483   : > { %v1414_v48 = vmul.f32 1.442695, %v1412_v46  ;;  %v4397_v46 = vld [vmem:[%s4621_s9 + $0x8] sm:$0xff] }
 0x484   : > { %3952 = vpow2.f32 %v1416_v47  ;;  %v3916_v49 = vpop.permute.xlu1 %3915  ;;  %v4404_v47 = vld [vmem:[%s4621_s9 + $0x10] sm:$0xff] }
 0x485   : > { %v3918_v50 = vunpack.i.h.bf16 %v3916_v49  ;;  %v3917_v51 = vunpack.i.l.bf16 %v3916_v49  ;;  %3954 = vpow2.f32 %v1414_v48 }
 0x487   : > { %v3803_v52 = vpack.c.bf16 %v3918_v50, %v3917_v51  ;;  %v4368_v53 = vpop.permute.xlu0 %577 }
 0x488   : > { %v674_v36 = vadd.f32 %v4306_v37, %v4368_v53  ;;  %v1125_v37 = vmul.f32 0.35355338, %v1116_v26 }
 0x489   : > { %3804 = vmatprep.subr.bf16.mxu0 %v3803_v52 }
 0x48a   : > { %3806 = vmatpush3.bf16.msra.mxu0 %v3803_v52  ;;  %v1127_v63 = vsel %vm855_vm2, %v1125_v37, -inf }
 0x48b   : > { %3650 = vmatprep.subr.mxu0 %v674_v36  ;;  %v1601_v58 = vpop.permute.xlu0 %1600 }
 0x48e   : > { %v3953_v54 = vpop.eup %3952 }
 0x48f   : > { %v1421_v55 = vsel %vm855_vm2, %v3953_v54, 0.0  ;;  %v3955_v56 = vpop.eup %3954 }
 0x490   : > { %1422 = vadd.xlane.f32.xlu1 %v1421_v55  ;;  %v1418_v57 = vsel %vm855_vm2, %v3955_v56, 0.0 }
 0x494   : > { %1419 = vadd.xlane.f32.xlu1 %v1418_v57 }
 0x4a5   : > { %1598 = vrot.lane.b32.xlu1 %v4296_v31, %s4075_s29 }
 0x4b8   : > { %v1132_v59 = vpop.xlane.xlu0 %1131 }
 0x4b9   : > { %v1134_v61 = vsub.f32 %v1126_v40, %v1132_v59  ;;  %v3391_v59 = vld [vmem:[%s4229_s30 + $0x18] sm:$0xff] }
 0x4bb   : > { %v1137_v62 = vmul.f32 1.442695, %v1134_v61 }
 0x4bd   : > { %3956 = vpow2.f32 %v1137_v62 }
 0x4c7   : > { %v3957_v0 = vpop.eup %3956 }
 0x4c8   : > { %v1142_v1 = vsel %vm855_vm2, %v3957_v0, 0.0 }
 0x4c9   : > { %1128 = vmax.xlane.f32.xlu1 %v1127_v63 }
 0x4cd   : > { %1143 = vadd.xlane.f32.xlu1 %v1142_v1 }
 0x51d   : > { %v1423_v4 = vpop.xlane.xlu1 %1422 }
 0x51e   : > { %3958 = vrcp.f32 %v1423_v4 }
 0x521   : > { %v1420_v6 = vpop.xlane.xlu1 %1419 }
 0x522   : > { %3960 = vrcp.f32 %v1420_v6 }
 0x525   : > { %v1599_v11 = vpop.permute.xlu1 %1598 }
 0x528   : > { %v3959_v8 = vpop.eup %3958 }
 0x529   : > { %v1427_v10 = vmul.f32 %v3959_v8, %v3953_v54 }
 0x52c   : > { %v3961_v9 = vpop.eup %3960 }
 0x52d   : > { %v1426_v31 = vmul.f32 %v3961_v9, %v3955_v56  ;;  %v4428_v9 = vld [vmem:[%s4621_s9 + $0x18] sm:$0xff] }
 0x52f   : > { %3642 = vmatprep.mubr.msk.f32.mxu0 %vm855_vm2, %v1426_v31  ;;  %v3392_v31 = vld [vmem:[%s4224_s24 + $0x20] sm:$0xff] }
 0x530   : > { %3643 = vmatmul.mubr.msk.f32.vlgmr.msra.gmra.mrb[8].mxu0 %vm855_vm2, %v1427_v10  ;;  %v3393_v10 = vld [vmem:[%s4224_s24 + $0x28] sm:$0xff] }
 0x531   : > { %3651 = vmatpush3.msra.mxu0 %v674_v36  ;;  %3652 = vmatprep.mubr.msk.f32.mxu0 %vm771_vm1, %v1599_v11  ;;  %v3819_v11 = vpack.c.bf16 %v3393_v10, %v3392_v31 }
 0x532   : > { %3812 = vmatprep.subr.bf16.mxu0 %v4197_v3 }
 0x534   : > { %3653 = vmatmul.mubr.msk.f32.vlgmr.msra.gmra.mrb[10].mxu0 %vm771_vm1, %v1601_v58  ;;  %v3390_v58 = vld [vmem:[%s4229_s30 + $0x10] sm:$0xff] }
 0x535   : > { %3814 = vmatpush3.bf16.msra.mxu0 %v4197_v3  ;;  %3675 = vmatprep.mubr.msk.f32.mxu0 %vm478_vm0, %v3390_v58 }
 0x536   : > { %3816 = vmatprep.subr.bf16.mxu0 %v4207_v7 }
 0x539   : > { %3818 = vmatpush3.bf16.msra.mxu0 %v4207_v7 }
 0x53a   : > { %3828 = vmatprep.subr.bf16.mxu0 %v4246_v19 }
 0x53c   : > { %3676 = vmatmul.mubr.msk.f32.vlgmr.msra.gmra.mrb[12].mxu0 %vm478_vm0, %v3391_v59 }
 0x53d   : > { %3830 = vmatpush3.bf16.msra.mxu0 %v4246_v19 }
 0x53e   : > { %3832 = vmatprep.subr.bf16.mxu0 %v4265_v24 }
 0x541   : > { %3834 = vmatpush3.bf16.msra.mxu0 %v4265_v24 }
 0x556   : > { %v1129_v12 = vpop.xlane.xlu1 %1128 }
 0x557   : > { %v1133_v13 = vsub.f32 %v1125_v37, %v1129_v12  ;;  %v3396_v12 = vld [vmem:[%s4270_s0 + $0x10] sm:$0xff] }
 0x558   : > { %3700 = vmatprep.mubr.msk.f32.mxu0 %vm478_vm0, %v3396_v12 }
 0x559   : > { %v1135_v14 = vmul.f32 1.442695, %v1133_v13  ;;  %v3397_v13 = vld [vmem:[%s4270_s0 + $0x18] sm:$0xff] }
 0x55a   : > { %v1144_v18 = vpop.xlane.xlu1 %1143  ;;  %3701 = vmatmul.mubr.msk.f32.vlgmr.msra.gmra.mrb[14].mxu0 %vm478_vm0, %v3397_v13 }
 0x55b   : > { %3962 = vpow2.f32 %v1135_v14  ;;  %v3394_v14 = vld [vmem:[%s4224_s24 + $0x30] sm:$0xff] }
 0x55c   : > { %3964 = vrcp.f32 %v1144_v18 }
 0x565   : > { %v3963_v15 = vpop.eup %3962 }
 0x566   : > { %v1139_v16 = vsel %vm855_vm2, %v3963_v15, 0.0  ;;  %v3965_v27 = vpop.eup %3964 }
 0x567   : > { %1140 = vadd.xlane.f32.xlu0 %v1139_v16  ;;  %v1148_v33 = vmul.f32 %v3965_v27, %v3957_v0 }
 0x57d   : > { %3920 = vrot.lane.b32.xlu0 %v4317_v45, %s4073_s15 }
 0x5f4   : > { %v1141_v3 = vpop.xlane.xlu0 %1140 }
 0x5f5   : > { %3966 = vrcp.f32 %v1141_v3 }
 0x5f8   : > { %v3921_v20 = vpop.permute.xlu0 %3920 }
 0x5f9   : > { %v3923_v21 = vunpack.i.h.bf16 %v3921_v20  ;;  %v3922_v7 = vunpack.i.l.bf16 %v3921_v20 }
 0x5fb   : > { %v3799_v26 = vpack.c.bf16 %v3923_v21, %v3922_v7 }
 0x5fd   : > { %3800 = vmatprep.subr.bf16.mxu1 %v3799_v26 }
 0x5fe   : > { %3802 = vmatpush3.bf16.msra.mxu1 %v3799_v26 }
 0x5ff   : > { %v3967_v29 = vpop.eup %3966  ;;  %3628 = vmatprep.subr.mxu1 %v4397_v46 }
 0x600   : > { %v1147_v30 = vmul.f32 %v3967_v29, %v3963_v15  ;;  %v3395_v15 = vld [vmem:[%s4224_s24 + $0x38] sm:$0xff]  ;;  %s416_s24 = sand.u32 1, %s4062_s18  }
 0x601   : > { %v3823_v3 = vpack.c.bf16 %v3395_v15, %v3394_v14  ;;  %s3345_s0 = sshll.u32 %s416_s24, 5 }
 0x602   : > { %3625 = vmatprep.mubr.msk.f32.mxu1 %vm855_vm2, %v1147_v30  ;;  %s4473_s16 = scalar_lea.vmem [#allocation2], %s3345_s0  ;;  %s4076_s0 = smov [#allocation2]  }
 0x603   : > { %3626 = vmatmul.mubr.msk.f32.vlgmr.msra.gmra.mrb[10].mxu1 %vm855_vm2, %v1148_v33  ;;  %v3644_v34 = vpop.f32.mrb[8].mxu0  ;;  %s4012_s14 = sshll.u32 %s4076_s0, 4  ;;  %s4013_s14 = int_to_ptr.vmem [resolvable:$false] %s4012_s14 }
 0x604   : > { %v1506_v35 = vpop.f32.mrb[9].mxu0  ;;  %3629 = vmatpush3.msra.mxu1 %v4397_v46  ;;  %s4014_s13 = scalar_lea.vmem %s4013_s14, 1024 }
 0x605   : > { %3645 = vmatprep.subr.mxu1 %v4404_v47 }
 0x607   : > { %v3654_v38 = vpop.f32.mrb[10].mxu0 }
 0x608   : > { %v1672_v40 = vpop.f32.mrb[11].mxu0  ;;  %v1682_v42 = vmul.f32 0.35355338, %v3654_v38 }
 0x609   : > { %v1681_v41 = vmul.f32 0.35355338, %v1672_v40 }
 0x60a   : > { %v1686_v44 = vsel %vm855_vm2, %v1682_v42, -inf }
 0x60b   : > { %v1683_v43 = vsel %vm855_vm2, %v1681_v41, -inf }
 0x60c   : > { %1684 = vmax.xlane.f32.xlu1 %v1683_v43 }
 0x60f   : > { %v3677_v20 = vpop.f32.mrb[12].mxu0 }
 0x610   : > { %1687 = vmax.xlane.f32.xlu1 %v1686_v44  ;;  %v1960_v21 = vpop.f32.mrb[13].mxu0 }
 0x611   : > { %v4451_v26 = vadd.f32 %v4293_v28, %v1960_v21 }
 0x613   : > { %3705 = vmatprep.mubr.msk.f32.mxu0 %vm771_vm1, %v4451_v26 }
 0x62d   : > { %v3702_v7 = vpop.f32.mrb[14].mxu0 }
 0x62e   : > { %v2126_v27 = vpop.f32.mrb[15].mxu0 }
 0x62f   : > { %v4457_v29 = vadd.f32 %v4313_v39, %v2126_v27 }
 0x699   : > { %v1685_v48 = vpop.xlane.xlu1 %1684 }
 0x69a   : > { %v1689_v49 = vsub.f32 %v1681_v41, %v1685_v48  ;;  %v4482_v41 = vadd.f32 %v3677_v20, %v4293_v28 }
 0x69c   : > { %v1691_v52 = vmul.f32 1.442695, %v1689_v49 }
 0x69d   : > { %v1688_v50 = vpop.xlane.xlu1 %1687 }
 0x69e   : > { %v1690_v51 = vsub.f32 %v1682_v42, %v1688_v50 }
 0x6a0   : > { %v1693_v36 = vmul.f32 1.442695, %v1690_v51 }
 0x6a2   : > { %3968 = vpow2.f32 %v1693_v36 }
 0x6a3   : > { %3970 = vpow2.f32 %v1691_v52 }
 0x6ac   : > { %v3969_v54 = vpop.eup %3968 }
 0x6ad   : > { %v1698_v55 = vsel %vm855_vm2, %v3969_v54, 0.0  ;;  %v3971_v56 = vpop.eup %3970 }
 0x6ae   : > { %1699 = vadd.xlane.f32.xlu1 %v1698_v55  ;;  %v1695_v57 = vsel %vm855_vm2, %v3971_v56, 0.0 }
 0x6b2   : > { %1696 = vadd.xlane.f32.xlu1 %v1695_v57 }
 0x6c3   : > { %3925 = vrot.lane.b32.xlu1 %v4317_v45, %s4075_s29 }
 0x6d6   : > { %v3627_v61 = vpop.f32.mrb[10].mxu1 }
 0x6d7   : > { %v1229_v62 = vpop.f32.mrb[11].mxu1 }
 0x6d8   : > { %3630 = vmatprep.mubr.msk.f32.mxu1 %vm771_vm1, %v1229_v62 }
 0x6d9   : > { %3631 = vmatmul.mubr.msk.f32.vlgmr.msra.gmra.mrb[8].mxu1 %vm771_vm1, %v3627_v61 }
 0x6da   : > { %3647 = vmatprep.mubr.msk.f32.mxu1 %vm771_vm1, %v1506_v35  ;;  %3646 = vmatpush3.msra.mxu1 %v4404_v47 }
 0x6e1   : > { %3648 = vmatmul.mubr.msk.f32.vlgmr.msra.gmra.mrb[8].mxu1 %vm771_vm1, %v3644_v34 }
 0x73b   : > { %v1700_v45 = vpop.xlane.xlu1 %1699 }
 0x73c   : > { %3972 = vrcp.f32 %v1700_v45 }
 0x73f   : > { %v1697_v19 = vpop.xlane.xlu1 %1696 }
 0x740   : > { %3974 = vrcp.f32 %v1697_v19 }
 0x743   : > { %v3926_v37 = vpop.permute.xlu1 %3925 }
 0x744   : > { %v3928_v24 = vunpack.i.h.bf16 %v3926_v37  ;;  %v3927_v63 = vunpack.i.l.bf16 %v3926_v37 }
 0x746   : > { %v3807_v0 = vpack.c.bf16 %v3928_v24, %v3927_v63  ;;  %v3973_v1 = vpop.eup %3972 }
 0x747   : > { %v1704_v8 = vmul.f32 %v3973_v1, %v3969_v54 }
 0x748   : > { %3808 = vmatprep.subr.bf16.mxu1 %v3807_v0 }
 0x749   : > { %3810 = vmatpush3.bf16.msra.mxu1 %v3807_v0 }
 0x74a   : > { %v3975_v4 = vpop.eup %3974  ;;  %3662 = vmatprep.subr.mxu1 %v4428_v9 }
 0x74b   : > { %v1703_v6 = vmul.f32 %v3975_v4, %v3971_v56 }
 0x74d   : > { %3659 = vmatprep.mubr.msk.f32.mxu1 %vm855_vm2, %v1703_v6 }
 0x74e   : > { %3660 = vmatmul.mubr.msk.f32.vlgmr.msra.gmra.mrb[12].mxu1 %vm855_vm2, %v1704_v8 }
 0x74f   : > { %3663 = vmatpush3.msra.mxu1 %v4428_v9 }
 0x750   : > { %3820 = vmatprep.subr.bf16.mxu1 %v3819_v11 }
 0x821   : > { %v3661_v16 = vpop.f32.mrb[12].mxu1 }
 0x822   : > { %v1783_v18 = vpop.f32.mrb[13].mxu1 }
 0x823   : > { %3664 = vmatprep.mubr.msk.f32.mxu1 %vm771_vm1, %v1783_v18 }
 0x824   : > { %3665 = vmatmul.mubr.msk.f32.vlgmr.msra.gmra.mrb[8].mxu1 %vm771_vm1, %v3661_v16 }
 0x825   : > { %3822 = vmatpush3.bf16.msra.mxu1 %v3819_v11  ;;  %3686 = vmatprep.mubr.msk.f32.mxu1 %vm478_vm0, %v4205_v5  ;;  %v4454_v5 = vadd.f32 %v3702_v7, %v4313_v39 }
 0x826   : > { %3824 = vmatprep.subr.bf16.mxu1 %v3823_v3 }
 0x829   : > { %3826 = vmatpush3.bf16.msra.mxu1 %v3823_v3 }
 0x82c   : > { %3687 = vmatmul.mubr.msk.f32.vlgmr.msra.gmra.mrb[14].mxu1 %vm478_vm0, %v4257_v22  ;;  %v3835_v22 = vpack.c.bf16 %v4454_v5, %v4457_v29 }
 0x82d   : > { %3689 = vmatprep.mubr.msk.f32.mxu1 %vm478_vm0, %v4263_v23  ;;  %v4469_v23 = vld [vmem:[%s4622_s10] ss:$0 sm:$0xff] }
 0x82e   : > { %3836 = vmatprep.subr.bf16.mxu1 %v3835_v22 }
 0x82f   : > { %3838 = vmatpush3.bf16.msra.mxu1 %v3835_v22 }
 0x830   : > { %3690 = vmatmul.mubr.msk.f32.gmra.mrb[16].mxu1 %vm478_vm0, %v4280_v25 }
 0x8f7   : > { %v3666_v25 = vpop.f32.mrb[8].mxu1 }
 0x8f8   : > { %v3851_v39 = vadd.f32 %v3666_v25, %v4469_v23  ;;  %v1864_v30 = vpop.f32.mrb[9].mxu1 }
 0x8f9   : > { %v3852_v33 = vadd.f32 %v4469_v23, %v1864_v30  ;;  %v3929_v30 = vpack.i.bf16 %v4454_v5, %v4457_v29 }
 0x8fa   : > { %1876 = vst.msk [vmem:[%s4473_s16 + $0x8] sm:$0xff] %vm478_vm0, %v3851_v39 }
 0x8fb   : > { %1875 = vst.msk [vmem:[%s4473_s16] sm:$0xff] %vm478_vm0, %v3852_v33 }
 0x8ff   : > { %v3688_v34 = vpop.f32.mrb[14].mxu1 }
 0x900   : > { %v2041_v35 = vadd.f32 %v3688_v34, %v4333_v60  ;;  %v2035_v38 = vpop.f32.mrb[15].mxu1 }
 0x901   : > { %v2036_v40 = vadd.f32 %v2035_v38, %v4300_v32 }
 0x902   : > { %3720 = vmatprep.subr.mxu1 %v2041_v35 }
 0x903   : > { %v4484_v42 = vpop.f32.mrb[16].mxu1  ;;  %3703 = vmatprep.subr.mxu0 %v2036_v40 }
 0x904   : > { %v2045_v43 = vpop.f32.mrb[17].mxu1  ;;  %3704 = vmatpush3.msra.mxu0 %v2036_v40 }
 0x905   : > { %3706 = vmatmul.mubr.msk.f32.vlgmr.msra.gmra.mrb[16].mxu0 %vm771_vm1, %v4482_v41  ;;  %3715 = vmatprep.subr.mxu0 %v4352_v17  ;;  %v2046_v63 = vadd.f32 %v2045_v43, %v4340_v2 }
 0x906   : > { %3716 = vmatpush3.msra.mxu0 %v4352_v17 }
 0x9d8   : > { %v3707_v60 = vpop.f32.mrb[16].mxu0 }
 0x9d9   : > { %v2217_v44 = vmul.f32 0.35355338, %v3707_v60  ;;  %v2207_v48 = vpop.f32.mrb[17].mxu0  ;;  %v2051_v60 = vadd.f32 %v4484_v42, %v4368_v53 }
 0x9da   : > { %v2216_v32 = vmul.f32 0.35355338, %v2207_v48 }
 0x9db   : > { %v2221_v49 = vsel %vm855_vm2, %v2217_v44, -inf }
 0x9dc   : > { %2222 = vmax.xlane.f32.xlu1 %v2221_v49  ;;  %v2218_v28 = vsel %vm855_vm2, %v2216_v32, -inf }
 0x9dd   : > { %2219 = vmax.xlane.f32.xlu0 %v2218_v28 }
 0x9ed   : > { %2406 = vrot.lane.b32.xlu1 %v4482_v41, %s4073_s15 }
 0xa69   : > { %v2223_v50 = vpop.xlane.xlu1 %2222 }
 0xa6a   : > { %v2225_v51 = vsub.f32 %v2217_v44, %v2223_v50  ;;  %v2220_v52 = vpop.xlane.xlu0 %2219 }
 0xa6b   : > { %v2224_v36 = vsub.f32 %v2216_v32, %v2220_v52 }
 0xa6c   : > { %v2228_v54 = vmul.f32 1.442695, %v2225_v51 }
 0xa6d   : > { %v2226_v55 = vmul.f32 1.442695, %v2224_v36  ;;  %v2407_v1 = vpop.permute.xlu1 %2406 }
 0xa6e   : > { %3976 = vpow2.f32 %v2228_v54 }
 0xa6f   : > { %3978 = vpow2.f32 %v2226_v55 }
 0xa78   : > { %v3977_v17 = vpop.eup %3976 }
 0xa79   : > { %v2233_v56 = vsel %vm855_vm2, %v3977_v17, 0.0  ;;  %v3979_v57 = vpop.eup %3978 }
 0xa7a   : > { %2234 = vadd.xlane.f32.xlu0 %v2233_v56  ;;  %v2230_v58 = vsel %vm855_vm2, %v3979_v57, 0.0 }
 0xa7e   : > { %2231 = vadd.xlane.f32.xlu0 %v2230_v58 }
 0xa94   : > { %2404 = vrot.lane.b32.xlu0 %v4451_v26, %s4073_s15 }
 0xa98   : > { %2683 = vrot.lane.b32.xlu0 %v4451_v26, %s4074_s12 }
 0xa9c   : > { %2685 = vrot.lane.b32.xlu0 %v4482_v41, %s4074_s12 }
 0xb07   : > { %v2235_v59 = vpop.xlane.xlu0 %2234 }
 0xb08   : > { %3980 = vrcp.f32 %v2235_v59 }
 0xb0b   : > { %v2232_v61 = vpop.xlane.xlu0 %2231 }
 0xb0c   : > { %3982 = vrcp.f32 %v2232_v61 }
 0xb0f   : > { %v2405_v45 = vpop.permute.xlu0 %2404 }
 0xb12   : > { %v3981_v62 = vpop.eup %3980 }
 0xb13   : > { %v2239_v24 = vmul.f32 %v3981_v62, %v3977_v17  ;;  %v2684_v0 = vpop.permute.xlu0 %2683 }
 0xb16   : > { %v3983_v19 = vpop.eup %3982 }
 0xb17   : > { %v2238_v37 = vmul.f32 %v3983_v19, %v3979_v57  ;;  %v2686_v4 = vpop.permute.xlu0 %2685 }
 0xb19   : > { %3712 = vmatprep.mubr.msk.f32.mxu1 %vm855_vm2, %v2238_v37 }
 0xb1a   : > { %3713 = vmatmul.mubr.msk.f32.vlgmr.msra.gmra.mrb[18].mxu1 %vm855_vm2, %v2239_v24 }
 0xb1b   : > { %3721 = vmatpush3.msra.mxu1 %v2041_v35  ;;  %3722 = vmatprep.mubr.msk.f32.mxu1 %vm771_vm1, %v2405_v45 }
 0xb1c   : > { %3737 = vmatprep.subr.mxu1 %v2046_v63 }
 0xb1e   : > { %3723 = vmatmul.mubr.msk.f32.vlgmr.msra.gmra.mrb[20].mxu1 %vm771_vm1, %v2407_v1 }
 0xb1f   : > { %3738 = vmatpush3.msra.mxu1 %v2046_v63  ;;  %3739 = vmatprep.mubr.msk.f32.mxu1 %vm771_vm1, %v2684_v0 }
 0xb22   : > { %3740 = vmatmul.mubr.msk.f32.vlgmr.msra.gmra.mrb[22].mxu1 %vm771_vm1, %v2686_v4 }
 0xbed   : > { %v3714_v6 = vpop.f32.mrb[18].mxu1 }
 0xbee   : > { %v2312_v8 = vpop.f32.mrb[19].mxu1 }
 0xbef   : > { %3717 = vmatprep.mubr.msk.f32.mxu0 %vm771_vm1, %v2312_v8 }
 0xbf0   : > { %3718 = vmatmul.mubr.msk.f32.vlgmr.msra.gmra.mrb[18].mxu0 %vm771_vm1, %v3714_v6 }
 0xbf1   : > { %v3724_v2 = vpop.f32.mrb[20].mxu1 }
 0xbf2   : > { %v2478_v31 = vpop.f32.mrb[21].mxu1  ;;  %v2488_v34 = vmul.f32 0.35355338, %v3724_v2 }
 0xbf3   : > { %v2487_v33 = vmul.f32 0.35355338, %v2478_v31 }
 0xbf4   : > { %v2492_v38 = vsel %vm855_vm2, %v2488_v34, -inf }
 0xbf5   : > { %v3741_v10 = vpop.f32.mrb[22].mxu1  ;;  %v2489_v35 = vsel %vm855_vm2, %v2487_v33, -inf }
 0xbf6   : > { %v2767_v11 = vmul.f32 0.35355338, %v3741_v10  ;;  %v2757_v12 = vpop.f32.mrb[23].mxu1 }
 0xbf7   : > { %v2766_v13 = vmul.f32 0.35355338, %v2757_v12 }
 0xbf8   : > { %v2771_v14 = vsel %vm855_vm2, %v2767_v11, -inf }
 0xbf9   : > { %2772 = vmax.xlane.f32.xlu0 %v2771_v14  ;;  %v2768_v15 = vsel %vm855_vm2, %v2766_v13, -inf }
 0xbfa   : > { %2769 = vmax.xlane.f32.xlu1 %v2768_v15 }
 0xc86   : > { %v2773_v16 = vpop.xlane.xlu0 %2772 }
 0xc87   : > { %v2775_v18 = vsub.f32 %v2767_v11, %v2773_v16  ;;  %v2770_v3 = vpop.xlane.xlu1 %2769 }
 0xc88   : > { %v2774_v20 = vsub.f32 %v2766_v13, %v2770_v3 }
 0xc89   : > { %v2778_v21 = vmul.f32 1.442695, %v2775_v18 }
 0xc8a   : > { %v2776_v7 = vmul.f32 1.442695, %v2774_v20 }
 0xc8b   : > { %3984 = vpow2.f32 %v2778_v21 }
 0xc8c   : > { %3986 = vpow2.f32 %v2776_v7 }
 0xc95   : > { %v3985_v27 = vpop.eup %3984 }
 0xc96   : > { %v3987_v22 = vpop.eup %3986  ;;  %v2783_v25 = vsel %vm855_vm2, %v3985_v27, 0.0 }
 0xc97   : > { %2784 = vadd.xlane.f32.xlu1 %v2783_v25  ;;  %v2780_v39 = vsel %vm855_vm2, %v3987_v22, 0.0 }
 0xc98   : > { %2781 = vadd.xlane.f32.xlu0 %v2780_v39 }
 0xca8   : > { %2960 = vrot.lane.b32.xlu1 %v4451_v26, %s4075_s29 }
 0xcac   : > { %2962 = vrot.lane.b32.xlu1 %v4482_v41, %s4075_s29 }
 0xcae   : > { %3930 = vrot.lane.b32.xlu0 %v3929_v30, %s4074_s12  ;;  %s3442_s12 = sshll.u32 %s4160_s21, 9  ;;  %s4571_s21 = scalar_lea.sflag [#allocation3], %s416_s24 }
 0xcaf   : > { %s4563_s30 = scalar_lea.hbm %s4623_s11, %s3442_s12 }
 0xccd   : > { %2490 = vmax.xlane.f32.xlu0 %v2489_v35 }
 0xcd0   : > { %2493 = vmax.xlane.f32.xlu1 %v2492_v38 }
 0xce1   : > { %3935 = vrot.lane.b32.xlu1 %v3929_v30, %s4073_s15  ;;  %s3255_s15 = sshll.u32 %s4473_s16, 4  ;;  %s4556_s15 = int_to_ptr.vmem [resolvable:$true] %s3255_s15 }
 0xce2   : > { %s4008_s25 = scalar_lea.vmem %s4556_s15, 512  ;;  %p4015_p0 = scmp.lt.s32.totalorder %s4556_s15, %s4013_s14 }
 0xce3   : > { %p4009_p11 = scmp.ne.s32.totalorder %s4556_s15, %s4008_s25  ;;  %p4016_p1 = scmp.lt.s32.totalorder %s4014_s13, %s4008_s25 }
 0xce5   : > { %3940 = vrot.lane.b32.xlu1 %v3929_v30, %s4075_s29  ;;  %p4010_p12 = pnand %p4009_p11, %p4177_p5  ;;  %p4017_p2 = por %p4016_p1, %p4015_p0 }
 0xce7   : > { %p4011_p13 = pneg %p4010_p12 }
 0xce9   : > { %p4018_p3 = pnand %p4017_p2, %p4011_p13 }
 0xd24   : > { %v2785_v26 = vpop.xlane.xlu1 %2784 }
 0xd25   : > { %3988 = vrcp.f32 %v2785_v26  ;;  %v2782_v40 = vpop.xlane.xlu0 %2781 }
 0xd26   : > { %3990 = vrcp.f32 %v2782_v40 }
 0xd28   : > { %v2961_v32 = vpop.permute.xlu1 %2960 }
 0xd29   : > { %v3931_v41 = vpop.permute.xlu0 %3930 }
 0xd2a   : > { %v3933_v5 = vunpack.i.h.bf16 %v3931_v41  ;;  %v3932_v29 = vunpack.i.l.bf16 %v3931_v41 }
 0xd2c   : > { %v3843_v43 = vpack.c.bf16 %v3933_v5, %v3932_v29  ;;  %v2963_v50 = vpop.permute.xlu1 %2962 }
 0xd2e   : > { %3844 = vmatprep.subr.bf16.mxu1 %v3843_v43 }
 0xd2f   : > { %v3989_v44 = vpop.eup %3988  ;;  %3846 = vmatpush3.bf16.msra.mxu1 %v3843_v43 }
 0xd30   : > { %v3991_v48 = vpop.eup %3990  ;;  %3754 = vmatprep.subr.mxu1 %v2051_v60  ;;  %v2789_v28 = vmul.f32 %v3989_v44, %v3985_v27 }
 0xd31   : > { %v2788_v49 = vmul.f32 %v3991_v48, %v3987_v22 }
 0xd33   : > { %3746 = vmatprep.mubr.msk.f32.mxu1 %vm855_vm2, %v2788_v49 }
 0xd34   : > { %3747 = vmatmul.mubr.msk.f32.vlgmr.msra.gmra.mrb[24].mxu1 %vm855_vm2, %v2789_v28 }
 0xd35   : > { %3755 = vmatpush3.msra.mxu1 %v2051_v60  ;;  %3756 = vmatprep.mubr.msk.f32.mxu1 %vm771_vm1, %v2961_v32 }
 0xd38   : > { %3757 = vmatmul.mubr.msk.f32.vlgmr.msra.gmra.mrb[26].mxu1 %vm771_vm1, %v2963_v50 }
 0xd5a   : > { %v2491_v51 = vpop.xlane.xlu0 %2490 }
 0xd5b   : > { %v2495_v53 = vsub.f32 %v2487_v33, %v2491_v51 }
 0xd5d   : > { %v2497_v42 = vmul.f32 1.442695, %v2495_v53  ;;  %v2494_v52 = vpop.xlane.xlu1 %2493 }
 0xd5e   : > { %v2496_v36 = vsub.f32 %v2488_v34, %v2494_v52 }
 0xd5f   : > { %3992 = vpow2.f32 %v2497_v42 }
 0xd60   : > { %v2499_v54 = vmul.f32 1.442695, %v2496_v36 }
 0xd61   : > { %v3936_v55 = vpop.permute.xlu1 %3935 }
 0xd62   : > { %3994 = vpow2.f32 %v2499_v54  ;;  %v3938_v17 = vunpack.i.h.bf16 %v3936_v55  ;;  %v3937_v56 = vunpack.i.l.bf16 %v3936_v55 }
 0xd64   : > { %v3839_v57 = vpack.c.bf16 %v3938_v17, %v3937_v56 }
 0xd65   : > { %v3941_v7 = vpop.permute.xlu1 %3940 }
 0xd66   : > { %3840 = vmatprep.subr.bf16.mxu0 %v3839_v57  ;;  %v3943_v27 = vunpack.i.h.bf16 %v3941_v7  ;;  %v3942_v22 = vunpack.i.l.bf16 %v3941_v7 }
 0xd67   : > { %3842 = vmatpush3.bf16.msra.mxu0 %v3839_v57 }
 0xd68   : > { %3732 = vmatprep.subr.mxu0 %v4397_v46  ;;  %v3847_v30 = vpack.c.bf16 %v3943_v27, %v3942_v22 }
 0xd69   : > { %v3993_v58 = vpop.eup %3992 }
 0xd6a   : > { %v2501_v59 = vsel %vm855_vm2, %v3993_v58, 0.0 }
 0xd6b   : > { %2502 = vadd.xlane.f32.xlu0 %v2501_v59 }
 0xd6c   : > { %v3995_v61 = vpop.eup %3994 }
 0xd6d   : > { %v2504_v62 = vsel %vm855_vm2, %v3995_v61, 0.0 }
 0xd6f   : > { %2505 = vadd.xlane.f32.xlu0 %v2504_v62 }
 0xdf8   : > { %v2503_v45 = vpop.xlane.xlu0 %2502 }
 0xdf9   : > { %3996 = vrcp.f32 %v2503_v45 }
 0xdfc   : > { %v2506_v19 = vpop.xlane.xlu0 %2505 }
 0xdfd   : > { %3998 = vrcp.f32 %v2506_v19 }
 0xe03   : > { %v3997_v37 = vpop.eup %3996 }
 0xe04   : > { %v2509_v24 = vmul.f32 %v3997_v37, %v3993_v58 }
 0xe06   : > { %3729 = vmatprep.mubr.msk.f32.mxu0 %vm855_vm2, %v2509_v24 }
 0xe07   : > { %v3999_v63 = vpop.eup %3998  ;;  %v3748_v0 = vpop.f32.mrb[24].mxu1 }
 0xe08   : > { %v2510_v1 = vmul.f32 %v3999_v63, %v3995_v61  ;;  %v2868_v4 = vpop.f32.mrb[25].mxu1 }
 0xe0a   : > { %3730 = vmatmul.mubr.msk.f32.vlgmr.msra.gmra.mrb[20].mxu0 %vm855_vm2, %v2510_v1 }
 0xe0b   : > { %v3758_v6 = vpop.f32.mrb[26].mxu1  ;;  %3733 = vmatpush3.msra.mxu0 %v4397_v46 }
 0xe0c   : > { %v3034_v8 = vpop.f32.mrb[27].mxu1  ;;  %3749 = vmatprep.subr.mxu0 %v4404_v47  ;;  %v3044_v31 = vmul.f32 0.35355338, %v3758_v6 }
 0xe0d   : > { %v3043_v2 = vmul.f32 0.35355338, %v3034_v8 }
 0xe0e   : > { %v3048_v11 = vsel %vm855_vm2, %v3044_v31, -inf }
 0xe0f   : > { %v3045_v10 = vsel %vm855_vm2, %v3043_v2, -inf }
 0xe10   : > { %3046 = vmax.xlane.f32.xlu0 %v3045_v10 }
 0xe14   : > { %3049 = vmax.xlane.f32.xlu0 %v3048_v11 }
 0xe9d   : > { %v3047_v12 = vpop.xlane.xlu0 %3046 }
 0xe9e   : > { %v3051_v13 = vsub.f32 %v3043_v2, %v3047_v12 }
 0xea0   : > { %v3053_v14 = vmul.f32 1.442695, %v3051_v13 }
 0xea1   : > { %v3050_v15 = vpop.xlane.xlu0 %3049 }
 0xea2   : > { %4000 = vpow2.f32 %v3053_v14  ;;  %v3052_v16 = vsub.f32 %v3044_v31, %v3050_v15 }
 0xea4   : > { %v3055_v18 = vmul.f32 1.442695, %v3052_v16 }
 0xea6   : > { %4002 = vpow2.f32 %v3055_v18 }
 0xeac   : > { %v4001_v46 = vpop.eup %4000 }
 0xead   : > { %v3057_v3 = vsel %vm855_vm2, %v4001_v46, 0.0 }
 0xeae   : > { %3058 = vadd.xlane.f32.xlu0 %v3057_v3 }
 0xeb0   : > { %v4003_v20 = vpop.eup %4002 }
 0xeb1   : > { %v3060_v21 = vsel %vm855_vm2, %v4003_v20, 0.0 }
 0xeb2   : > { %3061 = vadd.xlane.f32.xlu0 %v3060_v21 }
 0xedd   : > { %v3731_v25 = vpop.f32.mrb[20].mxu0 }
 0xede   : > { %v2591_v39 = vpop.f32.mrb[21].mxu0 }
 0xedf   : > { %3734 = vmatprep.mubr.msk.f32.mxu0 %vm771_vm1, %v2591_v39 }
 0xee0   : > { %3735 = vmatmul.mubr.msk.f32.vlgmr.msra.gmra.mrb[18].mxu0 %vm771_vm1, %v3731_v25 }
 0xee1   : > { %3750 = vmatpush3.msra.mxu0 %v4404_v47  ;;  %3751 = vmatprep.mubr.msk.f32.mxu0 %vm771_vm1, %v2868_v4 }
 0xee2   : > { %3848 = vmatprep.subr.bf16.mxu0 %v3847_v30 }
 0xee8   : > { %3752 = vmatmul.mubr.msk.f32.vlgmr.msra.gmra.mrb[18].mxu0 %vm771_vm1, %v3748_v0 }
 0xee9   : > { %3850 = vmatpush3.bf16.msra.mxu0 %v3847_v30 }
 0xeea   : > { %3766 = vmatprep.subr.mxu0 %v4428_v9 }
 0xf3b   : > { %v3059_v33 = vpop.xlane.xlu0 %3058 }
 0xf3c   : > { %4004 = vrcp.f32 %v3059_v33 }
 0xf3f   : > { %v3062_v34 = vpop.xlane.xlu0 %3061 }
 0xf40   : > { %4006 = vrcp.f32 %v3062_v34 }
 0xf46   : > { %v4005_v35 = vpop.eup %4004 }
 0xf47   : > { %v3065_v38 = vmul.f32 %v4005_v35, %v4001_v46 }
 0xf49   : > { %3763 = vmatprep.mubr.msk.f32.mxu0 %vm855_vm2, %v3065_v38 }
 0xf4a   : > { %v4007_v26 = vpop.eup %4006 }
 0xf4b   : > { %v3066_v47 = vmul.f32 %v4007_v26, %v4003_v20 }
 0xf4d   : > { %3764 = vmatmul.mubr.msk.f32.vlgmr.msra.gmra.mrb[22].mxu0 %vm855_vm2, %v3066_v47 }
 0xf4e   : > { %3767 = vmatpush3.msra.mxu0 %v4428_v9 }
0x1020   : > { %v3765_v40 = vpop.f32.mrb[22].mxu0 }
0x1021   : > { %v3145_v41 = vpop.f32.mrb[23].mxu0 }
0x1022   : > { %3768 = vmatprep.mubr.msk.f32.mxu0 %vm771_vm1, %v3145_v41 }
0x1023   : > { %3769 = vmatmul.mubr.msk.f32.vlgmr.msra.gmra.mrb[18].mxu0 %vm771_vm1, %v3765_v40 }
0x10f6   : > { %v3770_v5 = vpop.f32.mrb[18].mxu0 }
0x10f7   : > { %v3853_v29 = vadd.f32 %v3770_v5, %v4469_v23  ;;  %v3226_v43 = vpop.f32.mrb[19].mxu0 }
0x10f8   : > { %v3854_v9 = vadd.f32 %v4469_v23, %v3226_v43 }
0x10f9   : > { %3431 = vst.msk [vmem:[%s4473_s16 + $0x18] sm:$0xff] %vm478_vm0, %v3853_v29 }
0x10fa   : > { %3430 = vst.msk [vmem:[%s4473_s16 + $0x10] sm:$0xff] %vm478_vm0, %v3854_v9 }
0x10fb   : > { %4021 = shalt.err (!%p4018_p3)
}
0x10fc   : > { %s4022_s24 = scalar_lea.hbm %s4563_s30, 512  ;;  %s4026_s29 = scalar_lea.hbm %s4623_s11, 1024 }
0x10fd   : > { %p4023_p4 = scmp.ne.s32.totalorder %s4563_s30, %s4022_s24  ;;  %p4027_p9 = scmp.lt.u32.totalorder %s4563_s30, %s4623_s11 }
0x10fe   : > { %p4028_p10 = scmp.lt.u32.totalorder %s4026_s29, %s4022_s24  ;;  %p4030_p12 = scmp.lt.u32.totalorder %s4022_s24, %s4563_s30 }
0x10ff   : > { %p4024_p7 = pnand %p4023_p4, %p4177_p5 }
0x1100   : > { %p4029_p11 = por %p4028_p10, %p4027_p9 }
0x1101   : > { %p4025_p8 = pneg %p4024_p7 }
0x1102   : > { %p4031_p13 = por %p4030_p12, %p4029_p11 }
0x1104   : > { %p4032_p0 = pnand %p4031_p13, %p4025_p8 }
0x1106   : > { %4035 = shalt.err (!%p4032_p0)
}
0x1107   : > { %s4077_s25 = smov 128   ;;  %s4078_s14 = smov 8  }
0x1108   : > { %3867 = dma.vmem_to_hbm [thread:$0]  (%p4177_p5), %s4556_s15, 512, %s4563_s30, %s4571_s21, %s4077_s25, %s4077_s25, %s4078_s14  }
0x1109 PF: > { %p3873_p1 = scmp.ge.s32.totalorder %s4070_s20, 2  ;;  %s3270_s13 = sand.u32 1, %s4058_s17  }
0x110a   : > { %s3271_s24 = scalar_lea.sflag [#allocation3], %s3270_s13 }
0x110b   : > { %p3870_p2 = pnand %p3873_p1, %p4181_p6 }
0x110d   : > { %4053 = dma.done.wait (!%p3870_p2), %s3271_s24, 512  }
0x110e   : > { %4055 = vsyncadd (!%p3870_p2), %s3271_s24, 4294966784  ;;  %p21_p3 = scmp.ge.s32.totalorder %s4164_s23, 4   ;;  %s4628_s17 = smov %s4062_s18 }
0x110f   : > { %s4629_s18 = smov %s4066_s19  ;;  %s4630_s19 = smov %s4175_s26 }
0x1110   : > { %s4631_s20 = smov %s4164_s23  ;;  %23 = sbr.rel (!%p21_p3) target bundleno = 5 (0x5), region = 109 }
0x1117   :  { %3276 = vsyncpa [#allocation3], 1 }
0x1118   :  { %3278 = vsyncpa [#allocation3 + $0x1], 1 }

</bundles_post_ra>
